<compile_context>
chip_gen: v5e
topology: v5e:2x2
jax: 0.10.0
libtpu: 0.0.40
codegen_flags: <defaults>
</compile_context>

<pallas_src>
import functools
import math

import jax
import jax.numpy as jnp
from jax.experimental import pallas as pl
from jax.experimental.pallas import tpu as pltpu

# ---------------- synthetic BERT config (small shapes) ----------------
VOCAB = 50
MAX_POS = 16
HIDDEN = 32
N_HEADS = 4
HEAD_DIM = HIDDEN // N_HEADS
N_LAYERS = 2
INTERMEDIATE = 64
NUM_CLASSES = 7          # from the reference script
OTHER_DIM = 3            # other_features_dim from the reference script
LN_EPS = 1e-12
SLAB_LANES = 128         # lane width of the packed weight slab
NEG_INF = -1e9


# ---------------- single fused Pallas kernel (no grid: one invocation) ----------------
def _bert_fused_kernel(offsets, B, S,
                       ids_ref, mask_ref, other_ref, w_ref, logits_ref):
    """offsets: static dict name -> (row_offset, rows, cols) into the weight slab."""
    f32 = jnp.float32
    BS = B * S

    def load(name):
        r0, rows, cols = offsets[name]
        return w_ref[r0:r0 + rows, :cols]

    def layer_norm(x, g, b):
        mu = jnp.mean(x, axis=-1, keepdims=True)
        xc = x - mu
        var = jnp.mean(xc * xc, axis=-1, keepdims=True)
        return xc * jax.lax.rsqrt(var + LN_EPS) * g + b

    def mm(a, b):
        return jnp.dot(a, b, preferred_element_type=f32)

    # ---- embedding lookup pulled in-kernel: one-hot MXU matmul ----
    ids = ids_ref[...]                                                     # (BS, 1) int32
    onehot = (jax.lax.broadcasted_iota(jnp.int32, (BS, VOCAB), 1) == ids).astype(f32)
    x = mm(onehot, load("word_emb")) + load("pos_type")                    # (BS, H)
    x = layer_norm(x, load("emb_ln_g"), load("emb_ln_b"))

    # ---- additive attention bias over the whole (BS, BS) slab ----
    # Static block-diagonal part (0 within a batch element, -1e9 across) was packed
    # into the slab; the padding part comes from the runtime mask (1, BS).
    bias = load("attn_bias_block") + (1.0 - mask_ref[...]) * NEG_INF       # (BS, BS)

    for l in range(N_LAYERS):
        # ---- self-attention: one fused lane-dense QKV matmul per layer ----
        # 1/sqrt(HEAD_DIM) already folded into W_q / b_q at pack time.
        qkv = mm(x, load(f"wqkv_{l}")) + load(f"bqkv_{l}")                 # (BS, 3H)
        wo_off = offsets[f"wo_{l}"][0]
        attn = jnp.zeros((BS, HIDDEN), f32)
        for h in range(N_HEADS):
            q = qkv[:, h * HEAD_DIM:(h + 1) * HEAD_DIM]                    # (BS, d)
            k = qkv[:, HIDDEN + h * HEAD_DIM:HIDDEN + (h + 1) * HEAD_DIM]
            v = qkv[:, 2 * HIDDEN + h * HEAD_DIM:2 * HIDDEN + (h + 1) * HEAD_DIM]
            # q . k contracting on d == q @ k.T (no explicit transpose)
            scores = jax.lax.dot_general(q, k, (((1,), (1,)), ((), ())),
                                         preferred_element_type=f32) + bias
            m = jnp.max(scores, axis=-1, keepdims=True)
            p = jnp.exp(scores - m)
            p = p * pl.reciprocal(jnp.sum(p, axis=-1, keepdims=True), approx=True)
            ctx = mm(p, v)                                                 # (BS, d)
            # Fold Wo into the per-head accumulation (no head concat).
            wo_h = w_ref[wo_off + h * HEAD_DIM:wo_off + (h + 1) * HEAD_DIM, :HIDDEN]
            attn = attn + mm(ctx, wo_h)
        attn = attn + load(f"bo_{l}")
        x = layer_norm(x + attn, load(f"ln1_g_{l}"), load(f"ln1_b_{l}"))

        # ---- feed-forward ----
        hdd = mm(x, load(f"w1_{l}")) + load(f"b1_{l}")                     # (BS, I)
        hdd = 0.5 * hdd * (1.0 + jax.lax.erf(hdd * (1.0 / math.sqrt(2.0))))  # exact GELU
        ffn = mm(hdd, load(f"w2_{l}")) + load(f"b2_{l}")                   # (BS, H)
        x = layer_norm(x + ffn, load(f"ln2_g_{l}"), load(f"ln2_b_{l}"))

    # ---- pooler: tanh(W @ hidden[CLS]); CLS rows selected via packed one-hot matmul ----
    cls_rows = mm(load("cls_sel"), x)                                      # (B, H)
    pooled = jnp.tanh(mm(cls_rows, load("pool_w")) + load("pool_b"))       # (B, H)

    # ---- classifier on cat([pooled, other]) expressed as a split matmul ----
    logits_ref[...] = (mm(pooled, load("cls_w_h"))
                       + mm(other_ref[...], load("cls_w_o"))
                       + load("cls_b"))                                    # (B, C)


# ---------------- parameter init (deterministic synthetic weights) ----------------
# TODO(synk): the reference loads pretrained 'bert-base-chinese' weights from disk;
# synthetic weights of the same structure are used here instead.
def init_params(key):
    keys = iter(jax.random.split(key, 64))

    def w(shape, scale=0.02):
        return (scale * jax.random.normal(next(keys), shape)).astype(jnp.float32)

    def zeros(shape):
        return jnp.zeros(shape, jnp.float32)

    params = {
        "word_emb": w((VOCAB, HIDDEN)),
        "pos_emb": w((MAX_POS, HIDDEN)),
        "type_emb": w((2, HIDDEN)),
        "emb_ln_g": jnp.ones((HIDDEN,), jnp.float32),
        "emb_ln_b": zeros((HIDDEN,)),
        "layers": [],
        "pool_w": w((HIDDEN, HIDDEN)),
        "pool_b": zeros((HIDDEN,)),
        # classifier: Linear(hidden_size + other_features_dim, num_classes)
        "cls_w": w((HIDDEN + OTHER_DIM, NUM_CLASSES)),
        "cls_b": zeros((NUM_CLASSES,)),
    }
    for _ in range(N_LAYERS):
        params["layers"].append({
            "wq": w((HIDDEN, HIDDEN)), "bq": zeros((HIDDEN,)),
            "wk": w((HIDDEN, HIDDEN)), "bk": zeros((HIDDEN,)),
            "wv": w((HIDDEN, HIDDEN)), "bv": zeros((HIDDEN,)),
            "wo": w((HIDDEN, HIDDEN)), "bo": zeros((HIDDEN,)),
            "ln1_g": jnp.ones((HIDDEN,), jnp.float32), "ln1_b": zeros((HIDDEN,)),
            "w1": w((HIDDEN, INTERMEDIATE)), "b1": zeros((INTERMEDIATE,)),
            "w2": w((INTERMEDIATE, HIDDEN)), "b2": zeros((HIDDEN,)),
            "ln2_g": jnp.ones((HIDDEN,), jnp.float32), "ln2_b": zeros((HIDDEN,)),
        })
    return params


# ---------------- one-time repack into a single contiguous VMEM slab ----------------
def pack_params(p, B, S):
    """Pack every weight/bias (plus static attention/pooling helpers) into one
    lane-dense (R, 128) f32 slab with 8-aligned row offsets.  Also pre-folds the
    1/sqrt(HEAD_DIM) attention scale into W_q / b_q and pre-fuses Q/K/V."""
    scale = 1.0 / math.sqrt(HEAD_DIM)
    offsets = {}
    blocks = []
    row = 0

    def add(name, arr):
        nonlocal row
        arr = jnp.asarray(arr, jnp.float32)
        if arr.ndim == 1:
            arr = arr.reshape(1, -1)
        r, c = arr.shape
        pad_r = (-r) % 8
        blocks.append(jnp.pad(arr, ((0, pad_r), (0, SLAB_LANES - c))))
        offsets[name] = (row, r, c)
        row += r + pad_r

    BS = B * S
    # embeddings (position + token-type-0 pre-tiled over the batch)
    add("word_emb", p["word_emb"])
    pos_type = jnp.tile(p["pos_emb"][:S] + p["type_emb"][0][None, :], (B, 1))   # (BS, H)
    add("pos_type", pos_type)
    add("emb_ln_g", p["emb_ln_g"])
    add("emb_ln_b", p["emb_ln_b"])
    # static block-diagonal attention bias: 0 within a batch element, -1e9 across
    bid = jnp.arange(BS) // S
    add("attn_bias_block",
        jnp.where(bid[:, None] == bid[None, :], 0.0, NEG_INF).astype(jnp.float32))
    # CLS-row selector: one-hot (B, BS) picking row b*S
    add("cls_sel",
        (jnp.arange(BS)[None, :] == (jnp.arange(B) * S)[:, None]).astype(jnp.float32))

    for l, lyr in enumerate(p["layers"]):
        wqkv = jnp.concatenate([lyr["wq"] * scale, lyr["wk"], lyr["wv"]], axis=1)  # (H, 3H)
        bqkv = jnp.concatenate([lyr["bq"] * scale, lyr["bk"], lyr["bv"]], axis=0)  # (3H,)
        add(f"wqkv_{l}", wqkv)
        add(f"bqkv_{l}", bqkv)
        add(f"wo_{l}", lyr["wo"])
        add(f"bo_{l}", lyr["bo"])
        add(f"ln1_g_{l}", lyr["ln1_g"])
        add(f"ln1_b_{l}", lyr["ln1_b"])
        add(f"w1_{l}", lyr["w1"])
        add(f"b1_{l}", lyr["b1"])
        add(f"w2_{l}", lyr["w2"])
        add(f"b2_{l}", lyr["b2"])
        add(f"ln2_g_{l}", lyr["ln2_g"])
        add(f"ln2_b_{l}", lyr["ln2_b"])

    add("pool_w", p["pool_w"])
    add("pool_b", p["pool_b"])
    add("cls_w_h", p["cls_w"][:HIDDEN, :])   # pooled part of the classifier
    add("cls_w_o", p["cls_w"][HIDDEN:, :])   # other_features part
    add("cls_b", p["cls_b"])

    slab = jnp.concatenate(blocks, axis=0)   # (R, 128) f32, one contiguous DMA
    return {"slab": slab, "offsets": offsets}


# ---------------- forward pass (mirrors BERTClassifier.forward) ----------------
def make_forward(packed):
    offsets = packed["offsets"]

    def fwd(slab, input_ids, attention_mask, other_features):
        B, S = input_ids.shape
        BS = B * S
        ids = input_ids.astype(jnp.int32).reshape(BS, 1)
        mask = attention_mask.astype(jnp.float32).reshape(1, BS)
        other = other_features.astype(jnp.float32)

        vmem = pl.BlockSpec(memory_space=pltpu.MemorySpace.VMEM)  # whole array, VMEM resident
        kernel = functools.partial(_bert_fused_kernel, offsets, B, S)
        # Single dispatch, no grid: at B*S = 16 rows the kernel is overhead-bound,
        # so the batch is folded into the sublane axis instead of a grid axis.
        return pl.pallas_call(
            kernel,
            out_shape=jax.ShapeDtypeStruct((B, NUM_CLASSES), jnp.float32),
            in_specs=[vmem, vmem, vmem, vmem],
            out_specs=vmem,
        )(ids, mask, other, slab)

    return jax.jit(fwd)


if __name__ == "__main__":
    key = jax.random.PRNGKey(0)
    pkey, idkey, ofkey = jax.random.split(key, 3)

    B, S = 2, 8
    params = init_params(pkey)
    packed = pack_params(params, B, S)

    input_ids = jax.random.randint(idkey, (B, S), 0, VOCAB, dtype=jnp.int32)
    attention_mask = jnp.ones((B, S), jnp.float32).at[1, 6:].set(0.0)  # pad 2 tokens
    other_features = jax.random.normal(ofkey, (B, OTHER_DIM), dtype=jnp.float32)

    forward = make_forward(packed)
    logits = forward(packed["slab"], input_ids, attention_mask, other_features)
    logits = jax.block_until_ready(logits)
    assert logits.shape == (B, NUM_CLASSES)
    assert bool(jnp.all(jnp.isfinite(logits)))
    print("KERNEL_OK")
</pallas_src>

<mosaic_0001>
module attributes {stable_mosaic.version = 11 : i64} {
  func.func @_bert_fused_kernel(%arg0: memref<16x1xi32, #tpu.memory_space<vmem>>, %arg1: memref<1x16xf32, #tpu.memory_space<vmem>>, %arg2: memref<2x3xf32, #tpu.memory_space<vmem>>, %arg3: memref<648x128xf32, #tpu.memory_space<vmem>>, %arg4: memref<2x7xf32, #tpu.memory_space<vmem>>) attributes {dimension_semantics = [], scalar_prefetch = 0 : i64, scratch_operands = 0 : i64, tpu.core_type = #tpu.core_type<tc>} {
    %c0 = arith.constant 0 : index
    %c0_0 = arith.constant 0 : index
    %0 = vector.load %arg0[%c0, %c0_0] : memref<16x1xi32, #tpu.memory_space<vmem>>, vector<16x1xi32>
    %1 = tpu.iota {dimensions = array<i32: 1>} : vector<16x50xi32>
    %2 = vector.broadcast %0 : vector<16x1xi32> to vector<16x50xi32>
    %3 = arith.cmpi eq, %1, %2 : vector<16x50xi32>
    %4 = arith.extui %3 : vector<16x50xi1> to vector<16x50xi32>
    %5 = arith.sitofp %4 : vector<16x50xi32> to vector<16x50xf32>
    %c0_1 = arith.constant 0 : index
    %c0_2 = arith.constant 0 : index
    %6 = vector.load %arg3[%c0_1, %c0_2] : memref<648x128xf32, #tpu.memory_space<vmem>>, vector<50x32xf32>
    %cst = arith.constant dense<0.000000e+00> : vector<16x32xf32>
    %7 = tpu.matmul %5, %6, %cst {dimension_numbers = #tpu.dot_dimension_numbers<[1], [0], [0], [1], [0, 0, 1, 1], [], []>} : vector<16x50xf32>, vector<50x32xf32>, vector<16x32xf32> -> vector<16x32xf32>
    %c56 = arith.constant 56 : index
    %c0_3 = arith.constant 0 : index
    %8 = vector.load %arg3[%c56, %c0_3] : memref<648x128xf32, #tpu.memory_space<vmem>>, vector<16x32xf32>
    %9 = arith.addf %7, %8 : vector<16x32xf32>
    %c72 = arith.constant 72 : index
    %c0_4 = arith.constant 0 : index
    %10 = vector.load %arg3[%c72, %c0_4] : memref<648x128xf32, #tpu.memory_space<vmem>>, vector<1x32xf32>
    %c80 = arith.constant 80 : index
    %c0_5 = arith.constant 0 : index
    %11 = vector.load %arg3[%c80, %c0_5] : memref<648x128xf32, #tpu.memory_space<vmem>>, vector<1x32xf32>
    %cst_6 = arith.constant dense<0.000000e+00> : vector<16xf32>
    %12 = vector.multi_reduction <add>, %9, %cst_6 [1] : vector<16x32xf32> to vector<16xf32>
    %13 = vector.shape_cast %12 : vector<16xf32> to vector<16x1xf32>
    %cst_7 = arith.constant 3.200000e+01 : f32
    %14 = vector.broadcast %cst_7 : f32 to vector<16x1xf32>
    %15 = arith.divf %13, %14 : vector<16x1xf32>
    %16 = vector.broadcast %15 : vector<16x1xf32> to vector<16x32xf32>
    %17 = arith.subf %9, %16 : vector<16x32xf32>
    %18 = arith.mulf %17, %17 : vector<16x32xf32>
    %cst_8 = arith.constant dense<0.000000e+00> : vector<16xf32>
    %19 = vector.multi_reduction <add>, %18, %cst_8 [1] : vector<16x32xf32> to vector<16xf32>
    %20 = vector.shape_cast %19 : vector<16xf32> to vector<16x1xf32>
    %cst_9 = arith.constant 3.200000e+01 : f32
    %21 = vector.broadcast %cst_9 : f32 to vector<16x1xf32>
    %22 = arith.divf %20, %21 : vector<16x1xf32>
    %cst_10 = arith.constant 9.99999996E-13 : f32
    %23 = vector.broadcast %cst_10 : f32 to vector<16x1xf32>
    %24 = arith.addf %22, %23 : vector<16x1xf32>
    %25 = math.rsqrt %24 : vector<16x1xf32>
    %26 = vector.broadcast %25 : vector<16x1xf32> to vector<16x32xf32>
    %27 = arith.mulf %17, %26 : vector<16x32xf32>
    %28 = vector.broadcast %10 : vector<1x32xf32> to vector<16x32xf32>
    %29 = arith.mulf %27, %28 : vector<16x32xf32>
    %30 = vector.broadcast %11 : vector<1x32xf32> to vector<16x32xf32>
    %31 = arith.addf %29, %30 : vector<16x32xf32>
    %c88 = arith.constant 88 : index
    %c0_11 = arith.constant 0 : index
    %32 = vector.load %arg3[%c88, %c0_11] : memref<648x128xf32, #tpu.memory_space<vmem>>, vector<16x16xf32>
    %c0_12 = arith.constant 0 : index
    %c0_13 = arith.constant 0 : index
    %33 = vector.load %arg1[%c0_12, %c0_13] : memref<1x16xf32, #tpu.memory_space<vmem>>, vector<1x16xf32>
    %cst_14 = arith.constant 1.000000e+00 : f32
    %34 = vector.broadcast %cst_14 : f32 to vector<1x16xf32>
    %35 = arith.subf %34, %33 : vector<1x16xf32>
    %cst_15 = arith.constant -1.000000e+09 : f32
    %36 = vector.broadcast %cst_15 : f32 to vector<1x16xf32>
    %37 = arith.mulf %35, %36 : vector<1x16xf32>
    %38 = vector.broadcast %37 : vector<1x16xf32> to vector<16x16xf32>
    %39 = arith.addf %32, %38 : vector<16x16xf32>
    %c112 = arith.constant 112 : index
    %c0_16 = arith.constant 0 : index
    %40 = vector.load %arg3[%c112, %c0_16] : memref<648x128xf32, #tpu.memory_space<vmem>>, vector<32x96xf32>
    %cst_17 = arith.constant dense<0.000000e+00> : vector<16x96xf32>
    %41 = tpu.matmul %31, %40, %cst_17 {dimension_numbers = #tpu.dot_dimension_numbers<[1], [0], [0], [1], [0, 0, 1, 1], [], []>} : vector<16x32xf32>, vector<32x96xf32>, vector<16x96xf32> -> vector<16x96xf32>
    %c144 = arith.constant 144 : index
    %c0_18 = arith.constant 0 : index
    %42 = vector.load %arg3[%c144, %c0_18] : memref<648x128xf32, #tpu.memory_space<vmem>>, vector<1x96xf32>
    %43 = vector.broadcast %42 : vector<1x96xf32> to vector<16x96xf32>
    %44 = arith.addf %41, %43 : vector<16x96xf32>
    %cst_19 = arith.constant 0.000000e+00 : f32
    %45 = vector.broadcast %cst_19 : f32 to vector<16x32xf32>
    %46 = vector.extract_strided_slice %44 {offsets = [0, 0], sizes = [16, 8], strides = [1, 1]} : vector<16x96xf32> to vector<16x8xf32>
    %47 = vector.extract_strided_slice %44 {offsets = [0, 32], sizes = [16, 8], strides = [1, 1]} : vector<16x96xf32> to vector<16x8xf32>
    %48 = vector.extract_strided_slice %44 {offsets = [0, 64], sizes = [16, 8], strides = [1, 1]} : vector<16x96xf32> to vector<16x8xf32>
    %cst_20 = arith.constant dense<0.000000e+00> : vector<16x16xf32>
    %49 = tpu.matmul %46, %47, %cst_20 {dimension_numbers = #tpu.dot_dimension_numbers<[1], [1], [0], [0], [0, 0, 1, 0], [], []>} : vector<16x8xf32>, vector<16x8xf32>, vector<16x16xf32> -> vector<16x16xf32>
    %50 = arith.addf %49, %39 : vector<16x16xf32>
    %cst_21 = arith.constant dense<0xFF800000> : vector<16xf32>
    %51 = vector.multi_reduction <maximumf>, %50, %cst_21 [1] : vector<16x16xf32> to vector<16xf32>
    %52 = vector.shape_cast %51 : vector<16xf32> to vector<16x1xf32>
    %53 = vector.broadcast %52 : vector<16x1xf32> to vector<16x16xf32>
    %54 = arith.subf %50, %53 : vector<16x16xf32>
    %55 = math.exp %54 : vector<16x16xf32>
    %cst_22 = arith.constant dense<0.000000e+00> : vector<16xf32>
    %56 = vector.multi_reduction <add>, %55, %cst_22 [1] : vector<16x16xf32> to vector<16xf32>
    %57 = vector.shape_cast %56 : vector<16xf32> to vector<16x1xf32>
    %58 = tpu.reciprocal %57 {approx = true} : vector<16x1xf32> -> vector<16x1xf32>
    %59 = vector.broadcast %58 : vector<16x1xf32> to vector<16x16xf32>
    %60 = arith.mulf %55, %59 : vector<16x16xf32>
    %cst_23 = arith.constant dense<0.000000e+00> : vector<16x8xf32>
    %61 = tpu.matmul %60, %48, %cst_23 {dimension_numbers = #tpu.dot_dimension_numbers<[1], [0], [0], [1], [0, 0, 1, 1], [], []>} : vector<16x16xf32>, vector<16x8xf32>, vector<16x8xf32> -> vector<16x8xf32>
    %c152 = arith.constant 152 : index
    %c0_24 = arith.constant 0 : index
    %62 = vector.load %arg3[%c152, %c0_24] : memref<648x128xf32, #tpu.memory_space<vmem>>, vector<8x32xf32>
    %cst_25 = arith.constant dense<0.000000e+00> : vector<16x32xf32>
    %63 = tpu.matmul %61, %62, %cst_25 {dimension_numbers = #tpu.dot_dimension_numbers<[1], [0], [0], [1], [0, 0, 1, 1], [], []>} : vector<16x8xf32>, vector<8x32xf32>, vector<16x32xf32> -> vector<16x32xf32>
    %64 = arith.addf %45, %63 : vector<16x32xf32>
    %65 = vector.extract_strided_slice %44 {offsets = [0, 8], sizes = [16, 8], strides = [1, 1]} : vector<16x96xf32> to vector<16x8xf32>
    %66 = vector.extract_strided_slice %44 {offsets = [0, 40], sizes = [16, 8], strides = [1, 1]} : vector<16x96xf32> to vector<16x8xf32>
    %67 = vector.extract_strided_slice %44 {offsets = [0, 72], sizes = [16, 8], strides = [1, 1]} : vector<16x96xf32> to vector<16x8xf32>
    %cst_26 = arith.constant dense<0.000000e+00> : vector<16x16xf32>
    %68 = tpu.matmul %65, %66, %cst_26 {dimension_numbers = #tpu.dot_dimension_numbers<[1], [1], [0], [0], [0, 0, 1, 0], [], []>} : vector<16x8xf32>, vector<16x8xf32>, vector<16x16xf32> -> vector<16x16xf32>
    %69 = arith.addf %68, %39 : vector<16x16xf32>
    %cst_27 = arith.constant dense<0xFF800000> : vector<16xf32>
    %70 = vector.multi_reduction <maximumf>, %69, %cst_27 [1] : vector<16x16xf32> to vector<16xf32>
    %71 = vector.shape_cast %70 : vector<16xf32> to vector<16x1xf32>
    %72 = vector.broadcast %71 : vector<16x1xf32> to vector<16x16xf32>
    %73 = arith.subf %69, %72 : vector<16x16xf32>
    %74 = math.exp %73 : vector<16x16xf32>
    %cst_28 = arith.constant dense<0.000000e+00> : vector<16xf32>
    %75 = vector.multi_reduction <add>, %74, %cst_28 [1] : vector<16x16xf32> to vector<16xf32>
    %76 = vector.shape_cast %75 : vector<16xf32> to vector<16x1xf32>
    %77 = tpu.reciprocal %76 {approx = true} : vector<16x1xf32> -> vector<16x1xf32>
    %78 = vector.broadcast %77 : vector<16x1xf32> to vector<16x16xf32>
    %79 = arith.mulf %74, %78 : vector<16x16xf32>
    %cst_29 = arith.constant dense<0.000000e+00> : vector<16x8xf32>
    %80 = tpu.matmul %79, %67, %cst_29 {dimension_numbers = #tpu.dot_dimension_numbers<[1], [0], [0], [1], [0, 0, 1, 1], [], []>} : vector<16x16xf32>, vector<16x8xf32>, vector<16x8xf32> -> vector<16x8xf32>
    %c160 = arith.constant 160 : index
    %c0_30 = arith.constant 0 : index
    %81 = vector.load %arg3[%c160, %c0_30] : memref<648x128xf32, #tpu.memory_space<vmem>>, vector<8x32xf32>
    %cst_31 = arith.constant dense<0.000000e+00> : vector<16x32xf32>
    %82 = tpu.matmul %80, %81, %cst_31 {dimension_numbers = #tpu.dot_dimension_numbers<[1], [0], [0], [1], [0, 0, 1, 1], [], []>} : vector<16x8xf32>, vector<8x32xf32>, vector<16x32xf32> -> vector<16x32xf32>
    %83 = arith.addf %64, %82 : vector<16x32xf32>
    %84 = vector.extract_strided_slice %44 {offsets = [0, 16], sizes = [16, 8], strides = [1, 1]} : vector<16x96xf32> to vector<16x8xf32>
    %85 = vector.extract_strided_slice %44 {offsets = [0, 48], sizes = [16, 8], strides = [1, 1]} : vector<16x96xf32> to vector<16x8xf32>
    %86 = vector.extract_strided_slice %44 {offsets = [0, 80], sizes = [16, 8], strides = [1, 1]} : vector<16x96xf32> to vector<16x8xf32>
    %cst_32 = arith.constant dense<0.000000e+00> : vector<16x16xf32>
    %87 = tpu.matmul %84, %85, %cst_32 {dimension_numbers = #tpu.dot_dimension_numbers<[1], [1], [0], [0], [0, 0, 1, 0], [], []>} : vector<16x8xf32>, vector<16x8xf32>, vector<16x16xf32> -> vector<16x16xf32>
    %88 = arith.addf %87, %39 : vector<16x16xf32>
    %cst_33 = arith.constant dense<0xFF800000> : vector<16xf32>
    %89 = vector.multi_reduction <maximumf>, %88, %cst_33 [1] : vector<16x16xf32> to vector<16xf32>
    %90 = vector.shape_cast %89 : vector<16xf32> to vector<16x1xf32>
    %91 = vector.broadcast %90 : vector<16x1xf32> to vector<16x16xf32>
    %92 = arith.subf %88, %91 : vector<16x16xf32>
    %93 = math.exp %92 : vector<16x16xf32>
    %cst_34 = arith.constant dense<0.000000e+00> : vector<16xf32>
    %94 = vector.multi_reduction <add>, %93, %cst_34 [1] : vector<16x16xf32> to vector<16xf32>
    %95 = vector.shape_cast %94 : vector<16xf32> to vector<16x1xf32>
    %96 = tpu.reciprocal %95 {approx = true} : vector<16x1xf32> -> vector<16x1xf32>
    %97 = vector.broadcast %96 : vector<16x1xf32> to vector<16x16xf32>
    %98 = arith.mulf %93, %97 : vector<16x16xf32>
    %cst_35 = arith.constant dense<0.000000e+00> : vector<16x8xf32>
    %99 = tpu.matmul %98, %86, %cst_35 {dimension_numbers = #tpu.dot_dimension_numbers<[1], [0], [0], [1], [0, 0, 1, 1], [], []>} : vector<16x16xf32>, vector<16x8xf32>, vector<16x8xf32> -> vector<16x8xf32>
    %c168 = arith.constant 168 : index
    %c0_36 = arith.constant 0 : index
    %100 = vector.load %arg3[%c168, %c0_36] : memref<648x128xf32, #tpu.memory_space<vmem>>, vector<8x32xf32>
    %cst_37 = arith.constant dense<0.000000e+00> : vector<16x32xf32>
    %101 = tpu.matmul %99, %100, %cst_37 {dimension_numbers = #tpu.dot_dimension_numbers<[1], [0], [0], [1], [0, 0, 1, 1], [], []>} : vector<16x8xf32>, vector<8x32xf32>, vector<16x32xf32> -> vector<16x32xf32>
    %102 = arith.addf %83, %101 : vector<16x32xf32>
    %103 = vector.extract_strided_slice %44 {offsets = [0, 24], sizes = [16, 8], strides = [1, 1]} : vector<16x96xf32> to vector<16x8xf32>
    %104 = vector.extract_strided_slice %44 {offsets = [0, 56], sizes = [16, 8], strides = [1, 1]} : vector<16x96xf32> to vector<16x8xf32>
    %105 = vector.extract_strided_slice %44 {offsets = [0, 88], sizes = [16, 8], strides = [1, 1]} : vector<16x96xf32> to vector<16x8xf32>
    %cst_38 = arith.constant dense<0.000000e+00> : vector<16x16xf32>
    %106 = tpu.matmul %103, %104, %cst_38 {dimension_numbers = #tpu.dot_dimension_numbers<[1], [1], [0], [0], [0, 0, 1, 0], [], []>} : vector<16x8xf32>, vector<16x8xf32>, vector<16x16xf32> -> vector<16x16xf32>
    %107 = arith.addf %106, %39 : vector<16x16xf32>
    %cst_39 = arith.constant dense<0xFF800000> : vector<16xf32>
    %108 = vector.multi_reduction <maximumf>, %107, %cst_39 [1] : vector<16x16xf32> to vector<16xf32>
    %109 = vector.shape_cast %108 : vector<16xf32> to vector<16x1xf32>
    %110 = vector.broadcast %109 : vector<16x1xf32> to vector<16x16xf32>
    %111 = arith.subf %107, %110 : vector<16x16xf32>
    %112 = math.exp %111 : vector<16x16xf32>
    %cst_40 = arith.constant dense<0.000000e+00> : vector<16xf32>
    %113 = vector.multi_reduction <add>, %112, %cst_40 [1] : vector<16x16xf32> to vector<16xf32>
    %114 = vector.shape_cast %113 : vector<16xf32> to vector<16x1xf32>
    %115 = tpu.reciprocal %114 {approx = true} : vector<16x1xf32> -> vector<16x1xf32>
    %116 = vector.broadcast %115 : vector<16x1xf32> to vector<16x16xf32>
    %117 = arith.mulf %112, %116 : vector<16x16xf32>
    %cst_41 = arith.constant dense<0.000000e+00> : vector<16x8xf32>
    %118 = tpu.matmul %117, %105, %cst_41 {dimension_numbers = #tpu.dot_dimension_numbers<[1], [0], [0], [1], [0, 0, 1, 1], [], []>} : vector<16x16xf32>, vector<16x8xf32>, vector<16x8xf32> -> vector<16x8xf32>
    %c176 = arith.constant 176 : index
    %c0_42 = arith.constant 0 : index
    %119 = vector.load %arg3[%c176, %c0_42] : memref<648x128xf32, #tpu.memory_space<vmem>>, vector<8x32xf32>
    %cst_43 = arith.constant dense<0.000000e+00> : vector<16x32xf32>
    %120 = tpu.matmul %118, %119, %cst_43 {dimension_numbers = #tpu.dot_dimension_numbers<[1], [0], [0], [1], [0, 0, 1, 1], [], []>} : vector<16x8xf32>, vector<8x32xf32>, vector<16x32xf32> -> vector<16x32xf32>
    %121 = arith.addf %102, %120 : vector<16x32xf32>
    %c184 = arith.constant 184 : index
    %c0_44 = arith.constant 0 : index
    %122 = vector.load %arg3[%c184, %c0_44] : memref<648x128xf32, #tpu.memory_space<vmem>>, vector<1x32xf32>
    %123 = vector.broadcast %122 : vector<1x32xf32> to vector<16x32xf32>
    %124 = arith.addf %121, %123 : vector<16x32xf32>
    %125 = arith.addf %31, %124 : vector<16x32xf32>
    %c192 = arith.constant 192 : index
    %c0_45 = arith.constant 0 : index
    %126 = vector.load %arg3[%c192, %c0_45] : memref<648x128xf32, #tpu.memory_space<vmem>>, vector<1x32xf32>
    %c200 = arith.constant 200 : index
    %c0_46 = arith.constant 0 : index
    %127 = vector.load %arg3[%c200, %c0_46] : memref<648x128xf32, #tpu.memory_space<vmem>>, vector<1x32xf32>
    %cst_47 = arith.constant dense<0.000000e+00> : vector<16xf32>
    %128 = vector.multi_reduction <add>, %125, %cst_47 [1] : vector<16x32xf32> to vector<16xf32>
    %129 = vector.shape_cast %128 : vector<16xf32> to vector<16x1xf32>
    %cst_48 = arith.constant 3.200000e+01 : f32
    %130 = vector.broadcast %cst_48 : f32 to vector<16x1xf32>
    %131 = arith.divf %129, %130 : vector<16x1xf32>
    %132 = vector.broadcast %131 : vector<16x1xf32> to vector<16x32xf32>
    %133 = arith.subf %125, %132 : vector<16x32xf32>
    %134 = arith.mulf %133, %133 : vector<16x32xf32>
    %cst_49 = arith.constant dense<0.000000e+00> : vector<16xf32>
    %135 = vector.multi_reduction <add>, %134, %cst_49 [1] : vector<16x32xf32> to vector<16xf32>
    %136 = vector.shape_cast %135 : vector<16xf32> to vector<16x1xf32>
    %cst_50 = arith.constant 3.200000e+01 : f32
    %137 = vector.broadcast %cst_50 : f32 to vector<16x1xf32>
    %138 = arith.divf %136, %137 : vector<16x1xf32>
    %cst_51 = arith.constant 9.99999996E-13 : f32
    %139 = vector.broadcast %cst_51 : f32 to vector<16x1xf32>
    %140 = arith.addf %138, %139 : vector<16x1xf32>
    %141 = math.rsqrt %140 : vector<16x1xf32>
    %142 = vector.broadcast %141 : vector<16x1xf32> to vector<16x32xf32>
    %143 = arith.mulf %133, %142 : vector<16x32xf32>
    %144 = vector.broadcast %126 : vector<1x32xf32> to vector<16x32xf32>
    %145 = arith.mulf %143, %144 : vector<16x32xf32>
    %146 = vector.broadcast %127 : vector<1x32xf32> to vector<16x32xf32>
    %147 = arith.addf %145, %146 : vector<16x32xf32>
    %c208 = arith.constant 208 : index
    %c0_52 = arith.constant 0 : index
    %148 = vector.load %arg3[%c208, %c0_52] : memref<648x128xf32, #tpu.memory_space<vmem>>, vector<32x64xf32>
    %cst_53 = arith.constant dense<0.000000e+00> : vector<16x64xf32>
    %149 = tpu.matmul %147, %148, %cst_53 {dimension_numbers = #tpu.dot_dimension_numbers<[1], [0], [0], [1], [0, 0, 1, 1], [], []>} : vector<16x32xf32>, vector<32x64xf32>, vector<16x64xf32> -> vector<16x64xf32>
    %c240 = arith.constant 240 : index
    %c0_54 = arith.constant 0 : index
    %150 = vector.load %arg3[%c240, %c0_54] : memref<648x128xf32, #tpu.memory_space<vmem>>, vector<1x64xf32>
    %151 = vector.broadcast %150 : vector<1x64xf32> to vector<16x64xf32>
    %152 = arith.addf %149, %151 : vector<16x64xf32>
    %cst_55 = arith.constant 5.000000e-01 : f32
    %153 = vector.broadcast %cst_55 : f32 to vector<16x64xf32>
    %154 = arith.mulf %153, %152 : vector<16x64xf32>
    %cst_56 = arith.constant 0.707106769 : f32
    %155 = vector.broadcast %cst_56 : f32 to vector<16x64xf32>
    %156 = arith.mulf %152, %155 : vector<16x64xf32>
    %157 = math.erf %156 : vector<16x64xf32>
    %cst_57 = arith.constant 1.000000e+00 : f32
    %158 = vector.broadcast %cst_57 : f32 to vector<16x64xf32>
    %159 = arith.addf %158, %157 : vector<16x64xf32>
    %160 = arith.mulf %154, %159 : vector<16x64xf32>
    %c248 = arith.constant 248 : index
    %c0_58 = arith.constant 0 : index
    %161 = vector.load %arg3[%c248, %c0_58] : memref<648x128xf32, #tpu.memory_space<vmem>>, vector<64x32xf32>
    %cst_59 = arith.constant dense<0.000000e+00> : vector<16x32xf32>
    %162 = tpu.matmul %160, %161, %cst_59 {dimension_numbers = #tpu.dot_dimension_numbers<[1], [0], [0], [1], [0, 0, 1, 1], [], []>} : vector<16x64xf32>, vector<64x32xf32>, vector<16x32xf32> -> vector<16x32xf32>
    %c312 = arith.constant 312 : index
    %c0_60 = arith.constant 0 : index
    %163 = vector.load %arg3[%c312, %c0_60] : memref<648x128xf32, #tpu.memory_space<vmem>>, vector<1x32xf32>
    %164 = vector.broadcast %163 : vector<1x32xf32> to vector<16x32xf32>
    %165 = arith.addf %162, %164 : vector<16x32xf32>
    %166 = arith.addf %147, %165 : vector<16x32xf32>
    %c320 = arith.constant 320 : index
    %c0_61 = arith.constant 0 : index
    %167 = vector.load %arg3[%c320, %c0_61] : memref<648x128xf32, #tpu.memory_space<vmem>>, vector<1x32xf32>
    %c328 = arith.constant 328 : index
    %c0_62 = arith.constant 0 : index
    %168 = vector.load %arg3[%c328, %c0_62] : memref<648x128xf32, #tpu.memory_space<vmem>>, vector<1x32xf32>
    %cst_63 = arith.constant dense<0.000000e+00> : vector<16xf32>
    %169 = vector.multi_reduction <add>, %166, %cst_63 [1] : vector<16x32xf32> to vector<16xf32>
    %170 = vector.shape_cast %169 : vector<16xf32> to vector<16x1xf32>
    %cst_64 = arith.constant 3.200000e+01 : f32
    %171 = vector.broadcast %cst_64 : f32 to vector<16x1xf32>
    %172 = arith.divf %170, %171 : vector<16x1xf32>
    %173 = vector.broadcast %172 : vector<16x1xf32> to vector<16x32xf32>
    %174 = arith.subf %166, %173 : vector<16x32xf32>
    %175 = arith.mulf %174, %174 : vector<16x32xf32>
    %cst_65 = arith.constant dense<0.000000e+00> : vector<16xf32>
    %176 = vector.multi_reduction <add>, %175, %cst_65 [1] : vector<16x32xf32> to vector<16xf32>
    %177 = vector.shape_cast %176 : vector<16xf32> to vector<16x1xf32>
    %cst_66 = arith.constant 3.200000e+01 : f32
    %178 = vector.broadcast %cst_66 : f32 to vector<16x1xf32>
    %179 = arith.divf %177, %178 : vector<16x1xf32>
    %cst_67 = arith.constant 9.99999996E-13 : f32
    %180 = vector.broadcast %cst_67 : f32 to vector<16x1xf32>
    %181 = arith.addf %179, %180 : vector<16x1xf32>
    %182 = math.rsqrt %181 : vector<16x1xf32>
    %183 = vector.broadcast %182 : vector<16x1xf32> to vector<16x32xf32>
    %184 = arith.mulf %174, %183 : vector<16x32xf32>
    %185 = vector.broadcast %167 : vector<1x32xf32> to vector<16x32xf32>
    %186 = arith.mulf %184, %185 : vector<16x32xf32>
    %187 = vector.broadcast %168 : vector<1x32xf32> to vector<16x32xf32>
    %188 = arith.addf %186, %187 : vector<16x32xf32>
    %c336 = arith.constant 336 : index
    %c0_68 = arith.constant 0 : index
    %189 = vector.load %arg3[%c336, %c0_68] : memref<648x128xf32, #tpu.memory_space<vmem>>, vector<32x96xf32>
    %cst_69 = arith.constant dense<0.000000e+00> : vector<16x96xf32>
    %190 = tpu.matmul %188, %189, %cst_69 {dimension_numbers = #tpu.dot_dimension_numbers<[1], [0], [0], [1], [0, 0, 1, 1], [], []>} : vector<16x32xf32>, vector<32x96xf32>, vector<16x96xf32> -> vector<16x96xf32>
    %c368 = arith.constant 368 : index
    %c0_70 = arith.constant 0 : index
    %191 = vector.load %arg3[%c368, %c0_70] : memref<648x128xf32, #tpu.memory_space<vmem>>, vector<1x96xf32>
    %192 = vector.broadcast %191 : vector<1x96xf32> to vector<16x96xf32>
    %193 = arith.addf %190, %192 : vector<16x96xf32>
    %cst_71 = arith.constant 0.000000e+00 : f32
    %194 = vector.broadcast %cst_71 : f32 to vector<16x32xf32>
    %195 = vector.extract_strided_slice %193 {offsets = [0, 0], sizes = [16, 8], strides = [1, 1]} : vector<16x96xf32> to vector<16x8xf32>
    %196 = vector.extract_strided_slice %193 {offsets = [0, 32], sizes = [16, 8], strides = [1, 1]} : vector<16x96xf32> to vector<16x8xf32>
    %197 = vector.extract_strided_slice %193 {offsets = [0, 64], sizes = [16, 8], strides = [1, 1]} : vector<16x96xf32> to vector<16x8xf32>
    %cst_72 = arith.constant dense<0.000000e+00> : vector<16x16xf32>
    %198 = tpu.matmul %195, %196, %cst_72 {dimension_numbers = #tpu.dot_dimension_numbers<[1], [1], [0], [0], [0, 0, 1, 0], [], []>} : vector<16x8xf32>, vector<16x8xf32>, vector<16x16xf32> -> vector<16x16xf32>
    %199 = arith.addf %198, %39 : vector<16x16xf32>
    %cst_73 = arith.constant dense<0xFF800000> : vector<16xf32>
    %200 = vector.multi_reduction <maximumf>, %199, %cst_73 [1] : vector<16x16xf32> to vector<16xf32>
    %201 = vector.shape_cast %200 : vector<16xf32> to vector<16x1xf32>
    %202 = vector.broadcast %201 : vector<16x1xf32> to vector<16x16xf32>
    %203 = arith.subf %199, %202 : vector<16x16xf32>
    %204 = math.exp %203 : vector<16x16xf32>
    %cst_74 = arith.constant dense<0.000000e+00> : vector<16xf32>
    %205 = vector.multi_reduction <add>, %204, %cst_74 [1] : vector<16x16xf32> to vector<16xf32>
    %206 = vector.shape_cast %205 : vector<16xf32> to vector<16x1xf32>
    %207 = tpu.reciprocal %206 {approx = true} : vector<16x1xf32> -> vector<16x1xf32>
    %208 = vector.broadcast %207 : vector<16x1xf32> to vector<16x16xf32>
    %209 = arith.mulf %204, %208 : vector<16x16xf32>
    %cst_75 = arith.constant dense<0.000000e+00> : vector<16x8xf32>
    %210 = tpu.matmul %209, %197, %cst_75 {dimension_numbers = #tpu.dot_dimension_numbers<[1], [0], [0], [1], [0, 0, 1, 1], [], []>} : vector<16x16xf32>, vector<16x8xf32>, vector<16x8xf32> -> vector<16x8xf32>
    %c376 = arith.constant 376 : index
    %c0_76 = arith.constant 0 : index
    %211 = vector.load %arg3[%c376, %c0_76] : memref<648x128xf32, #tpu.memory_space<vmem>>, vector<8x32xf32>
    %cst_77 = arith.constant dense<0.000000e+00> : vector<16x32xf32>
    %212 = tpu.matmul %210, %211, %cst_77 {dimension_numbers = #tpu.dot_dimension_numbers<[1], [0], [0], [1], [0, 0, 1, 1], [], []>} : vector<16x8xf32>, vector<8x32xf32>, vector<16x32xf32> -> vector<16x32xf32>
    %213 = arith.addf %194, %212 : vector<16x32xf32>
    %214 = vector.extract_strided_slice %193 {offsets = [0, 8], sizes = [16, 8], strides = [1, 1]} : vector<16x96xf32> to vector<16x8xf32>
    %215 = vector.extract_strided_slice %193 {offsets = [0, 40], sizes = [16, 8], strides = [1, 1]} : vector<16x96xf32> to vector<16x8xf32>
    %216 = vector.extract_strided_slice %193 {offsets = [0, 72], sizes = [16, 8], strides = [1, 1]} : vector<16x96xf32> to vector<16x8xf32>
    %cst_78 = arith.constant dense<0.000000e+00> : vector<16x16xf32>
    %217 = tpu.matmul %214, %215, %cst_78 {dimension_numbers = #tpu.dot_dimension_numbers<[1], [1], [0], [0], [0, 0, 1, 0], [], []>} : vector<16x8xf32>, vector<16x8xf32>, vector<16x16xf32> -> vector<16x16xf32>
    %218 = arith.addf %217, %39 : vector<16x16xf32>
    %cst_79 = arith.constant dense<0xFF800000> : vector<16xf32>
    %219 = vector.multi_reduction <maximumf>, %218, %cst_79 [1] : vector<16x16xf32> to vector<16xf32>
    %220 = vector.shape_cast %219 : vector<16xf32> to vector<16x1xf32>
    %221 = vector.broadcast %220 : vector<16x1xf32> to vector<16x16xf32>
    %222 = arith.subf %218, %221 : vector<16x16xf32>
    %223 = math.exp %222 : vector<16x16xf32>
    %cst_80 = arith.constant dense<0.000000e+00> : vector<16xf32>
    %224 = vector.multi_reduction <add>, %223, %cst_80 [1] : vector<16x16xf32> to vector<16xf32>
    %225 = vector.shape_cast %224 : vector<16xf32> to vector<16x1xf32>
    %226 = tpu.reciprocal %225 {approx = true} : vector<16x1xf32> -> vector<16x1xf32>
    %227 = vector.broadcast %226 : vector<16x1xf32> to vector<16x16xf32>
    %228 = arith.mulf %223, %227 : vector<16x16xf32>
    %cst_81 = arith.constant dense<0.000000e+00> : vector<16x8xf32>
    %229 = tpu.matmul %228, %216, %cst_81 {dimension_numbers = #tpu.dot_dimension_numbers<[1], [0], [0], [1], [0, 0, 1, 1], [], []>} : vector<16x16xf32>, vector<16x8xf32>, vector<16x8xf32> -> vector<16x8xf32>
    %c384 = arith.constant 384 : index
    %c0_82 = arith.constant 0 : index
    %230 = vector.load %arg3[%c384, %c0_82] : memref<648x128xf32, #tpu.memory_space<vmem>>, vector<8x32xf32>
    %cst_83 = arith.constant dense<0.000000e+00> : vector<16x32xf32>
    %231 = tpu.matmul %229, %230, %cst_83 {dimension_numbers = #tpu.dot_dimension_numbers<[1], [0], [0], [1], [0, 0, 1, 1], [], []>} : vector<16x8xf32>, vector<8x32xf32>, vector<16x32xf32> -> vector<16x32xf32>
    %232 = arith.addf %213, %231 : vector<16x32xf32>
    %233 = vector.extract_strided_slice %193 {offsets = [0, 16], sizes = [16, 8], strides = [1, 1]} : vector<16x96xf32> to vector<16x8xf32>
    %234 = vector.extract_strided_slice %193 {offsets = [0, 48], sizes = [16, 8], strides = [1, 1]} : vector<16x96xf32> to vector<16x8xf32>
    %235 = vector.extract_strided_slice %193 {offsets = [0, 80], sizes = [16, 8], strides = [1, 1]} : vector<16x96xf32> to vector<16x8xf32>
    %cst_84 = arith.constant dense<0.000000e+00> : vector<16x16xf32>
    %236 = tpu.matmul %233, %234, %cst_84 {dimension_numbers = #tpu.dot_dimension_numbers<[1], [1], [0], [0], [0, 0, 1, 0], [], []>} : vector<16x8xf32>, vector<16x8xf32>, vector<16x16xf32> -> vector<16x16xf32>
    %237 = arith.addf %236, %39 : vector<16x16xf32>
    %cst_85 = arith.constant dense<0xFF800000> : vector<16xf32>
    %238 = vector.multi_reduction <maximumf>, %237, %cst_85 [1] : vector<16x16xf32> to vector<16xf32>
    %239 = vector.shape_cast %238 : vector<16xf32> to vector<16x1xf32>
    %240 = vector.broadcast %239 : vector<16x1xf32> to vector<16x16xf32>
    %241 = arith.subf %237, %240 : vector<16x16xf32>
    %242 = math.exp %241 : vector<16x16xf32>
    %cst_86 = arith.constant dense<0.000000e+00> : vector<16xf32>
    %243 = vector.multi_reduction <add>, %242, %cst_86 [1] : vector<16x16xf32> to vector<16xf32>
    %244 = vector.shape_cast %243 : vector<16xf32> to vector<16x1xf32>
    %245 = tpu.reciprocal %244 {approx = true} : vector<16x1xf32> -> vector<16x1xf32>
    %246 = vector.broadcast %245 : vector<16x1xf32> to vector<16x16xf32>
    %247 = arith.mulf %242, %246 : vector<16x16xf32>
    %cst_87 = arith.constant dense<0.000000e+00> : vector<16x8xf32>
    %248 = tpu.matmul %247, %235, %cst_87 {dimension_numbers = #tpu.dot_dimension_numbers<[1], [0], [0], [1], [0, 0, 1, 1], [], []>} : vector<16x16xf32>, vector<16x8xf32>, vector<16x8xf32> -> vector<16x8xf32>
    %c392 = arith.constant 392 : index
    %c0_88 = arith.constant 0 : index
    %249 = vector.load %arg3[%c392, %c0_88] : memref<648x128xf32, #tpu.memory_space<vmem>>, vector<8x32xf32>
    %cst_89 = arith.constant dense<0.000000e+00> : vector<16x32xf32>
    %250 = tpu.matmul %248, %249, %cst_89 {dimension_numbers = #tpu.dot_dimension_numbers<[1], [0], [0], [1], [0, 0, 1, 1], [], []>} : vector<16x8xf32>, vector<8x32xf32>, vector<16x32xf32> -> vector<16x32xf32>
    %251 = arith.addf %232, %250 : vector<16x32xf32>
    %252 = vector.extract_strided_slice %193 {offsets = [0, 24], sizes = [16, 8], strides = [1, 1]} : vector<16x96xf32> to vector<16x8xf32>
    %253 = vector.extract_strided_slice %193 {offsets = [0, 56], sizes = [16, 8], strides = [1, 1]} : vector<16x96xf32> to vector<16x8xf32>
    %254 = vector.extract_strided_slice %193 {offsets = [0, 88], sizes = [16, 8], strides = [1, 1]} : vector<16x96xf32> to vector<16x8xf32>
    %cst_90 = arith.constant dense<0.000000e+00> : vector<16x16xf32>
    %255 = tpu.matmul %252, %253, %cst_90 {dimension_numbers = #tpu.dot_dimension_numbers<[1], [1], [0], [0], [0, 0, 1, 0], [], []>} : vector<16x8xf32>, vector<16x8xf32>, vector<16x16xf32> -> vector<16x16xf32>
    %256 = arith.addf %255, %39 : vector<16x16xf32>
    %cst_91 = arith.constant dense<0xFF800000> : vector<16xf32>
    %257 = vector.multi_reduction <maximumf>, %256, %cst_91 [1] : vector<16x16xf32> to vector<16xf32>
    %258 = vector.shape_cast %257 : vector<16xf32> to vector<16x1xf32>
    %259 = vector.broadcast %258 : vector<16x1xf32> to vector<16x16xf32>
    %260 = arith.subf %256, %259 : vector<16x16xf32>
    %261 = math.exp %260 : vector<16x16xf32>
    %cst_92 = arith.constant dense<0.000000e+00> : vector<16xf32>
    %262 = vector.multi_reduction <add>, %261, %cst_92 [1] : vector<16x16xf32> to vector<16xf32>
    %263 = vector.shape_cast %262 : vector<16xf32> to vector<16x1xf32>
    %264 = tpu.reciprocal %263 {approx = true} : vector<16x1xf32> -> vector<16x1xf32>
    %265 = vector.broadcast %264 : vector<16x1xf32> to vector<16x16xf32>
    %266 = arith.mulf %261, %265 : vector<16x16xf32>
    %cst_93 = arith.constant dense<0.000000e+00> : vector<16x8xf32>
    %267 = tpu.matmul %266, %254, %cst_93 {dimension_numbers = #tpu.dot_dimension_numbers<[1], [0], [0], [1], [0, 0, 1, 1], [], []>} : vector<16x16xf32>, vector<16x8xf32>, vector<16x8xf32> -> vector<16x8xf32>
    %c400 = arith.constant 400 : index
    %c0_94 = arith.constant 0 : index
    %268 = vector.load %arg3[%c400, %c0_94] : memref<648x128xf32, #tpu.memory_space<vmem>>, vector<8x32xf32>
    %cst_95 = arith.constant dense<0.000000e+00> : vector<16x32xf32>
    %269 = tpu.matmul %267, %268, %cst_95 {dimension_numbers = #tpu.dot_dimension_numbers<[1], [0], [0], [1], [0, 0, 1, 1], [], []>} : vector<16x8xf32>, vector<8x32xf32>, vector<16x32xf32> -> vector<16x32xf32>
    %270 = arith.addf %251, %269 : vector<16x32xf32>
    %c408 = arith.constant 408 : index
    %c0_96 = arith.constant 0 : index
    %271 = vector.load %arg3[%c408, %c0_96] : memref<648x128xf32, #tpu.memory_space<vmem>>, vector<1x32xf32>
    %272 = vector.broadcast %271 : vector<1x32xf32> to vector<16x32xf32>
    %273 = arith.addf %270, %272 : vector<16x32xf32>
    %274 = arith.addf %188, %273 : vector<16x32xf32>
    %c416 = arith.constant 416 : index
    %c0_97 = arith.constant 0 : index
    %275 = vector.load %arg3[%c416, %c0_97] : memref<648x128xf32, #tpu.memory_space<vmem>>, vector<1x32xf32>
    %c424 = arith.constant 424 : index
    %c0_98 = arith.constant 0 : index
    %276 = vector.load %arg3[%c424, %c0_98] : memref<648x128xf32, #tpu.memory_space<vmem>>, vector<1x32xf32>
    %cst_99 = arith.constant dense<0.000000e+00> : vector<16xf32>
    %277 = vector.multi_reduction <add>, %274, %cst_99 [1] : vector<16x32xf32> to vector<16xf32>
    %278 = vector.shape_cast %277 : vector<16xf32> to vector<16x1xf32>
    %cst_100 = arith.constant 3.200000e+01 : f32
    %279 = vector.broadcast %cst_100 : f32 to vector<16x1xf32>
    %280 = arith.divf %278, %279 : vector<16x1xf32>
    %281 = vector.broadcast %280 : vector<16x1xf32> to vector<16x32xf32>
    %282 = arith.subf %274, %281 : vector<16x32xf32>
    %283 = arith.mulf %282, %282 : vector<16x32xf32>
    %cst_101 = arith.constant dense<0.000000e+00> : vector<16xf32>
    %284 = vector.multi_reduction <add>, %283, %cst_101 [1] : vector<16x32xf32> to vector<16xf32>
    %285 = vector.shape_cast %284 : vector<16xf32> to vector<16x1xf32>
    %cst_102 = arith.constant 3.200000e+01 : f32
    %286 = vector.broadcast %cst_102 : f32 to vector<16x1xf32>
    %287 = arith.divf %285, %286 : vector<16x1xf32>
    %cst_103 = arith.constant 9.99999996E-13 : f32
    %288 = vector.broadcast %cst_103 : f32 to vector<16x1xf32>
    %289 = arith.addf %287, %288 : vector<16x1xf32>
    %290 = math.rsqrt %289 : vector<16x1xf32>
    %291 = vector.broadcast %290 : vector<16x1xf32> to vector<16x32xf32>
    %292 = arith.mulf %282, %291 : vector<16x32xf32>
    %293 = vector.broadcast %275 : vector<1x32xf32> to vector<16x32xf32>
    %294 = arith.mulf %292, %293 : vector<16x32xf32>
    %295 = vector.broadcast %276 : vector<1x32xf32> to vector<16x32xf32>
    %296 = arith.addf %294, %295 : vector<16x32xf32>
    %c432 = arith.constant 432 : index
    %c0_104 = arith.constant 0 : index
    %297 = vector.load %arg3[%c432, %c0_104] : memref<648x128xf32, #tpu.memory_space<vmem>>, vector<32x64xf32>
    %cst_105 = arith.constant dense<0.000000e+00> : vector<16x64xf32>
    %298 = tpu.matmul %296, %297, %cst_105 {dimension_numbers = #tpu.dot_dimension_numbers<[1], [0], [0], [1], [0, 0, 1, 1], [], []>} : vector<16x32xf32>, vector<32x64xf32>, vector<16x64xf32> -> vector<16x64xf32>
    %c464 = arith.constant 464 : index
    %c0_106 = arith.constant 0 : index
    %299 = vector.load %arg3[%c464, %c0_106] : memref<648x128xf32, #tpu.memory_space<vmem>>, vector<1x64xf32>
    %300 = vector.broadcast %299 : vector<1x64xf32> to vector<16x64xf32>
    %301 = arith.addf %298, %300 : vector<16x64xf32>
    %cst_107 = arith.constant 5.000000e-01 : f32
    %302 = vector.broadcast %cst_107 : f32 to vector<16x64xf32>
    %303 = arith.mulf %302, %301 : vector<16x64xf32>
    %cst_108 = arith.constant 0.707106769 : f32
    %304 = vector.broadcast %cst_108 : f32 to vector<16x64xf32>
    %305 = arith.mulf %301, %304 : vector<16x64xf32>
    %306 = math.erf %305 : vector<16x64xf32>
    %cst_109 = arith.constant 1.000000e+00 : f32
    %307 = vector.broadcast %cst_109 : f32 to vector<16x64xf32>
    %308 = arith.addf %307, %306 : vector<16x64xf32>
    %309 = arith.mulf %303, %308 : vector<16x64xf32>
    %c472 = arith.constant 472 : index
    %c0_110 = arith.constant 0 : index
    %310 = vector.load %arg3[%c472, %c0_110] : memref<648x128xf32, #tpu.memory_space<vmem>>, vector<64x32xf32>
    %cst_111 = arith.constant dense<0.000000e+00> : vector<16x32xf32>
    %311 = tpu.matmul %309, %310, %cst_111 {dimension_numbers = #tpu.dot_dimension_numbers<[1], [0], [0], [1], [0, 0, 1, 1], [], []>} : vector<16x64xf32>, vector<64x32xf32>, vector<16x32xf32> -> vector<16x32xf32>
    %c536 = arith.constant 536 : index
    %c0_112 = arith.constant 0 : index
    %312 = vector.load %arg3[%c536, %c0_112] : memref<648x128xf32, #tpu.memory_space<vmem>>, vector<1x32xf32>
    %313 = vector.broadcast %312 : vector<1x32xf32> to vector<16x32xf32>
    %314 = arith.addf %311, %313 : vector<16x32xf32>
    %315 = arith.addf %296, %314 : vector<16x32xf32>
    %c544 = arith.constant 544 : index
    %c0_113 = arith.constant 0 : index
    %316 = vector.load %arg3[%c544, %c0_113] : memref<648x128xf32, #tpu.memory_space<vmem>>, vector<1x32xf32>
    %c552 = arith.constant 552 : index
    %c0_114 = arith.constant 0 : index
    %317 = vector.load %arg3[%c552, %c0_114] : memref<648x128xf32, #tpu.memory_space<vmem>>, vector<1x32xf32>
    %cst_115 = arith.constant dense<0.000000e+00> : vector<16xf32>
    %318 = vector.multi_reduction <add>, %315, %cst_115 [1] : vector<16x32xf32> to vector<16xf32>
    %319 = vector.shape_cast %318 : vector<16xf32> to vector<16x1xf32>
    %cst_116 = arith.constant 3.200000e+01 : f32
    %320 = vector.broadcast %cst_116 : f32 to vector<16x1xf32>
    %321 = arith.divf %319, %320 : vector<16x1xf32>
    %322 = vector.broadcast %321 : vector<16x1xf32> to vector<16x32xf32>
    %323 = arith.subf %315, %322 : vector<16x32xf32>
    %324 = arith.mulf %323, %323 : vector<16x32xf32>
    %cst_117 = arith.constant dense<0.000000e+00> : vector<16xf32>
    %325 = vector.multi_reduction <add>, %324, %cst_117 [1] : vector<16x32xf32> to vector<16xf32>
    %326 = vector.shape_cast %325 : vector<16xf32> to vector<16x1xf32>
    %cst_118 = arith.constant 3.200000e+01 : f32
    %327 = vector.broadcast %cst_118 : f32 to vector<16x1xf32>
    %328 = arith.divf %326, %327 : vector<16x1xf32>
    %cst_119 = arith.constant 9.99999996E-13 : f32
    %329 = vector.broadcast %cst_119 : f32 to vector<16x1xf32>
    %330 = arith.addf %328, %329 : vector<16x1xf32>
    %331 = math.rsqrt %330 : vector<16x1xf32>
    %332 = vector.broadcast %331 : vector<16x1xf32> to vector<16x32xf32>
    %333 = arith.mulf %323, %332 : vector<16x32xf32>
    %334 = vector.broadcast %316 : vector<1x32xf32> to vector<16x32xf32>
    %335 = arith.mulf %333, %334 : vector<16x32xf32>
    %336 = vector.broadcast %317 : vector<1x32xf32> to vector<16x32xf32>
    %337 = arith.addf %335, %336 : vector<16x32xf32>
    %c104 = arith.constant 104 : index
    %c0_120 = arith.constant 0 : index
    %338 = vector.load %arg3[%c104, %c0_120] : memref<648x128xf32, #tpu.memory_space<vmem>>, vector<2x16xf32>
    %cst_121 = arith.constant dense<0.000000e+00> : vector<2x32xf32>
    %339 = tpu.matmul %338, %337, %cst_121 {dimension_numbers = #tpu.dot_dimension_numbers<[1], [0], [0], [1], [0, 0, 1, 1], [], []>} : vector<2x16xf32>, vector<16x32xf32>, vector<2x32xf32> -> vector<2x32xf32>
    %c560 = arith.constant 560 : index
    %c0_122 = arith.constant 0 : index
    %340 = vector.load %arg3[%c560, %c0_122] : memref<648x128xf32, #tpu.memory_space<vmem>>, vector<32x32xf32>
    %cst_123 = arith.constant dense<0.000000e+00> : vector<2x32xf32>
    %341 = tpu.matmul %339, %340, %cst_123 {dimension_numbers = #tpu.dot_dimension_numbers<[1], [0], [0], [1], [0, 0, 1, 1], [], []>} : vector<2x32xf32>, vector<32x32xf32>, vector<2x32xf32> -> vector<2x32xf32>
    %c592 = arith.constant 592 : index
    %c0_124 = arith.constant 0 : index
    %342 = vector.load %arg3[%c592, %c0_124] : memref<648x128xf32, #tpu.memory_space<vmem>>, vector<1x32xf32>
    %343 = vector.broadcast %342 : vector<1x32xf32> to vector<2x32xf32>
    %344 = arith.addf %341, %343 : vector<2x32xf32>
    %345 = math.tanh %344 : vector<2x32xf32>
    %c600 = arith.constant 600 : index
    %c0_125 = arith.constant 0 : index
    %346 = vector.load %arg3[%c600, %c0_125] : memref<648x128xf32, #tpu.memory_space<vmem>>, vector<32x7xf32>
    %cst_126 = arith.constant dense<0.000000e+00> : vector<2x7xf32>
    %347 = tpu.matmul %345, %346, %cst_126 {dimension_numbers = #tpu.dot_dimension_numbers<[1], [0], [0], [1], [0, 0, 1, 1], [], []>} : vector<2x32xf32>, vector<32x7xf32>, vector<2x7xf32> -> vector<2x7xf32>
    %c0_127 = arith.constant 0 : index
    %c0_128 = arith.constant 0 : index
    %348 = vector.load %arg2[%c0_127, %c0_128] : memref<2x3xf32, #tpu.memory_space<vmem>>, vector<2x3xf32>
    %c632 = arith.constant 632 : index
    %c0_129 = arith.constant 0 : index
    %349 = vector.load %arg3[%c632, %c0_129] : memref<648x128xf32, #tpu.memory_space<vmem>>, vector<3x7xf32>
    %cst_130 = arith.constant dense<0.000000e+00> : vector<2x7xf32>
    %350 = tpu.matmul %348, %349, %cst_130 {dimension_numbers = #tpu.dot_dimension_numbers<[1], [0], [0], [1], [0, 0, 1, 1], [], []>} : vector<2x3xf32>, vector<3x7xf32>, vector<2x7xf32> -> vector<2x7xf32>
    %351 = arith.addf %347, %350 : vector<2x7xf32>
    %c640 = arith.constant 640 : index
    %c0_131 = arith.constant 0 : index
    %352 = vector.load %arg3[%c640, %c0_131] : memref<648x128xf32, #tpu.memory_space<vmem>>, vector<1x7xf32>
    %353 = vector.broadcast %352 : vector<1x7xf32> to vector<2x7xf32>
    %354 = arith.addf %351, %353 : vector<2x7xf32>
    %c0_132 = arith.constant 0 : index
    %c0_133 = arith.constant 0 : index
    %355 = vector.load %arg4[%c0_132, %c0_133] : memref<2x7xf32, #tpu.memory_space<vmem>>, vector<2x7xf32>
    tpu.vector_store %arg4[%c0_132, %c0_133], %354 {strides = array<i32>} : memref<2x7xf32, #tpu.memory_space<vmem>>, vector<2x7xf32>,
    return
  }
}

</mosaic_0001>

<bundles_post_ra>
// kernel: fwd.1
= control target key start
LH: loop header
LB: loop body
LE: loop exit
PB: predicated region body
PF: predicated region fallthrough
CT: control target
= control target key end

     0   :  { %9 = vsyncpa [#allocation3], 0  ;;  %s2608_s0 = inlined_call_operand.vmem [shape: s32[16,1], index: 0, kind: input, shape index: {}]   ;;  %s2609_s1 = inlined_call_operand.vmem [shape: f32[1,16], index: 1, kind: input, shape index: {}]   ;;  %s2610_s2 = inlined_call_operand.vmem [shape: f32[2,3], index: 2, kind: input, shape index: {}]   ;;  %s2611_s3 = inlined_call_operand.hbm [shape: f32[648,128], index: 3, kind: input, shape index: {}]   ;;  %s2612_s4 = inlined_call_operand.hbm [shape: f32[2,7], index: 4, kind: output, shape index: {}]  }
   0x1   :  { %10 = vsyncpa [#allocation4], 0  ;;  %s21_s17 = sshll.u32 %s2611_s3, 4  ;;  %s2246_s18 = smov [#allocation2]   ;;  %s22_s17 = int_to_ptr.hbm [resolvable:$true] %s21_s17 }
   0x2   :  { %s23_s19 = sshll.u32 %s2246_s18, 4  ;;  %s2247_s20 = smov 128   ;;  %s24_s19 = int_to_ptr.vmem [resolvable:$true] %s23_s19 }
   0x3   :  { %s2248_s21 = smov 8  }
   0x4   :  { %29 = dma.hbm_to_vmem [thread:$0]  %s22_s17, 10368, %s24_s19, [#allocation3], %s2247_s20, %s2247_s20, %s2248_s21  }
   0x5   :  { %2242 = dma.done.wait [#allocation3], 10368  }
   0x6   :  { %2243 = vsyncadd [#allocation3], 4294956928  ;;  %v2249_v0 = vmov 0   ;;  %vm66_vm0 = vcmask 1041408   ;;  %v34_v1 = vld [vmem:[%s2608_s0] sm:$0xff]  ;;  %v55_v3 = vld [vmem:[#allocation2 + $0x28] sm:$0xff]  ;;  %v36_v10 = vlaneseq }
   0x7   :  { %2037 = vset.pattern.permute.xlu0 %v2249_v0  ;;  %v56_v2 = vld [vmem:[#allocation2 + $0x30] sm:$0x3]  ;;  %v54_v4 = vld [vmem:[#allocation2 + $0x20] sm:$0xff]  ;;  %v53_v5 = vld [vmem:[#allocation2 + $0x18] sm:$0xff]  ;;  %vm59_vm1 = vcmask 408576   ;;  %v2250_v13 = vmov 0.0  }
   0x8   :  { %39 = vperm.xlu0 %2037, %v34_v1   ;;  %1931 = vmatpush.msk.msra.mxu0 %vm66_vm0, %v56_v2  ;;  %v35_v6 = vld [vmem:[%s2608_s0 + $0x8] sm:$0xff]  ;;  %v52_v7 = vld [vmem:[#allocation2 + $0x10] sm:$0xff]  ;;  %v50_v9 = vld [vmem:[#allocation2] sm:$0xff]  ;;  %v37_v11 = vand.u32 127, %v36_v10  ;;  %vm95_vm4 = vcmask 261120   ;;  %v2251_v25 = vmov 32.0  }
   0x9   :  { %v51_v8 = vld [vmem:[#allocation2 + $0x8] sm:$0xff]  ;;  %v57_v17 = vld [vmem:[#allocation2 + $0x38] sm:$0xff]  ;;  %v58_v21 = vld [vmem:[#allocation2 + $0x40] sm:$0xff]  ;;  %2098 = vrcp.f32 %v2251_v25  ;;  %s2252_s0 = smov 96   ;;  %vm204_vm12 = vcmask 64512   ;;  %vm236_vm13 = vcmask 130048  }
   0xa   :  { %80 = vmatpush.msra.mxu0 %v55_v3  ;;  %v166_v42 = vld [vmem:[#allocation2 + $0x88] sm:$0xff]  ;;  %v165_v43 = vld [vmem:[#allocation2 + $0x80] sm:$0xff]  ;;  %v164_v44 = vld [vmem:[#allocation2 + $0x78] sm:$0xff]  ;;  %s2254_s27 = smov 112   ;;  %s2255_s28 = smov 72  }
   0xb   :  { %187 = vmatpush.msra.mxu1 %v166_v42  ;;  %v163_v45 = vld [vmem:[#allocation2 + $0x70] sm:$0xff]  ;;  %v2078_v60 = vld [vmem:[#allocation2 + $0x48] ss:$0 sm:$0xff]  ;;  %v154_v25 = vld [vmem:[#allocation2 + $0x60] sm:$0xff]  ;;  %s2256_s29 = smov 104   ;;  %s2257_s30 = smov 64  }
   0xc   :  { %81 = vmatpush.msra.mxu0 %v54_v4  ;;  %v2079_v0 = vld [vmem:[#allocation2 + $0x50] ss:$0 sm:$0xff]  ;;  %s2258_s5 = smov 88   ;;  %s2259_s6 = smov 80  }
   0xd   :  { %188 = vmatpush.msra.mxu1 %v165_v43  ;;  %v2080_v10 = vld [vmem:[#allocation2 + $0x90] ss:$0 sm:$0xff]  ;;  %s2260_s7 = smov 56   ;;  %s2261_s8 = smov 40  }
   0xe   :  { %82 = vmatpush.msra.mxu0 %v53_v5  ;;  %s2262_s9 = smov 48   ;;  %s2263_s12 = smov [#allocation5]  }
   0xf   :  { %v2099_v26 = vpop.eup %2098  ;;  %189 = vmatpush.msra.mxu1 %v164_v44  ;;  %s1917_s13 = sshll.u32 %s2263_s12, 4  ;;  %s1919_s16 = sshll.u32 %s2612_s4, 4  ;;  %s1918_s13 = int_to_ptr.vmem [resolvable:$true] %s1917_s13  ;;  %s1920_s16 = int_to_ptr.hbm [resolvable:$true] %s1919_s16 }
  0x10   :  { %42 = vperm.xlu0 %2037, %v35_v6   ;;  %83 = vmatpush.msra.mxu0 %v52_v7  ;;  %v103_v27 = vmul.f32 32.0, %v2099_v26  ;;  %vm107_vm5 = vweird.f32 %v2099_v26 }
  0x11   :  { %190 = vmatpush.msra.mxu1 %v163_v45 }
  0x12   :  { %84 = vmatpush.msra.mxu0 %v51_v8  ;;  %v104_v28 = vsub.f32 1.0, %v103_v27 }
  0x14   :  { %85 = vmatpush.msra.mxu0 %v50_v9  ;;  %v105_v29 = vmul.f32 %v2099_v26, %v104_v28 }
  0x16   :  { %v106_v30 = vadd.f32 %v2099_v26, %v105_v29 }
  0x18   :  { %v2300_v31 = vsel %vm107_vm5, %v2099_v26, %v106_v30 }
  0x7a   :  { %v40_v12 = vpop.permute.xlu0 %39 }
  0x7b   :  { %vm44_vm2 = vcmp.eq.s32.totalorder %v37_v11, %v40_v12 }
  0x7c   :  { %v1929_v14 = vsel %vm44_vm2, 1.0, %v2250_v13 }
  0x7d   :  { %1932 = vmatmul.msk.f32.vlgmr.msra.gmra.mxu0 %vm59_vm1, %v1929_v14 }
  0x82   :  { %v43_v15 = vpop.permute.xlu0 %42 }
  0x83   :  { %vm45_vm3 = vcmp.eq.s32.totalorder %v37_v11, %v43_v15 }
  0x84   :  { %v1930_v16 = vsel %vm45_vm3, 1.0, %v2250_v13 }
  0x85   :  { %1933 = vmatmul.msk.f32.gmra.mxu0 %vm59_vm1, %v1930_v16 }
  0xfa   :  { %v87_v18 = vpop.f32.mrf.mxu0 }
  0xfb   :  { %v88_v19 = vadd.f32 %v87_v18, %v57_v17  ;;  %v155_v17 = vld [vmem:[%s2609_s1] sm:$0x1]  ;;  %s2253_s1 = smov 120  }
  0xfc   :  { %v156_v18 = vsub.f32 1.0, %v155_v17 }
  0xfd   :  { %v96_v20 = vsel %vm95_vm4, %v88_v19, 0.0 }
  0xfe   :  { %97 = vadd.xlane.f32.xlu1 %v96_v20 }
 0x102   :  { %v90_v22 = vpop.f32.mrf.mxu0 }
 0x103   :  { %v91_v23 = vadd.f32 %v90_v22, %v58_v21  ;;  %v153_v21 = vld [vmem:[#allocation2 + $0x58] sm:$0xff] }
 0x105   :  { %v99_v24 = vsel %vm95_vm4, %v91_v23, 0.0 }
 0x106   :  { %100 = vadd.xlane.f32.xlu1 %v99_v24 }
 0x171   :  { %v98_v32 = vpop.xlane.xlu1 %97 }
 0x172   :  { %v109_v33 = vmul.f32 %v2300_v31, %v98_v32 }
 0x174   :  { %v111_v34 = vsub.f32 %v88_v19, %v109_v33  ;;  %v157_v19 = vmul.f32 -1e+09, %v156_v18 }
 0x176   :  { %v113_v35 = vmul.f32 %v111_v34, %v111_v34  ;;  %v159_v20 = vperm.slane %v157_v19, 0 }
 0x178   :  { %v115_v36 = vsel %vm95_vm4, %v113_v35, 0.0  ;;  %v2325_v22 = vadd.f32 %v159_v20, %v153_v21  ;;  %v2329_v27 = vadd.f32 %v159_v20, %v154_v25 }
 0x179   :  { %116 = vadd.xlane.f32.xlu2 %v115_v36  ;;  %v101_v37 = vpop.xlane.xlu1 %100 }
 0x17a   :  { %v110_v38 = vmul.f32 %v2300_v31, %v101_v37 }
 0x17c   :  { %v112_v39 = vsub.f32 %v91_v23, %v110_v38 }
 0x17e   :  { %v114_v40 = vmul.f32 %v112_v39, %v112_v39 }
 0x180   :  { %v118_v41 = vsel %vm95_vm4, %v114_v40, 0.0 }
 0x181   :  { %119 = vadd.xlane.f32.xlu2 %v118_v41 }
 0x1ec   :  { %v117_v46 = vpop.xlane.xlu2 %116 }
 0x1ed   :  { %v121_v47 = vmul.f32 %v117_v46, %v2300_v31 }
 0x1ef   :  { %v123_v48 = vadd.f32 1e-12, %v121_v47 }
 0x1f1   :  { %2100 = vrsqrt.f32 %v123_v48  ;;  %vm131_vm7 = vweird.f32 %v123_v48 }
 0x1f4   :  { %v120_v49 = vpop.xlane.xlu2 %119 }
 0x1f5   :  { %v122_v50 = vmul.f32 %v120_v49, %v2300_v31 }
 0x1f7   :  { %v2101_v51 = vpop.eup %2100  ;;  %v124_v52 = vadd.f32 1e-12, %v122_v50  ;;  %v294_v50 = vld [vmem:[#allocation2 + $0x98] sm:$0xff] }
 0x1f8   :  { %v126_v53 = vmul.f32 %v2101_v51, %v123_v48  ;;  %vm132_vm6 = vweird.f32 %v2101_v51  ;;  %442 = vmatpush.msrb.mxu0 %v294_v50 }
 0x1f9   :  { %2102 = vrsqrt.f32 %v124_v52  ;;  %vm133_vm8 = vmor %vm131_vm7, %vm132_vm6  ;;  %vm141_vm10 = vweird.f32 %v124_v52 }
 0x1fa   :  { %v127_v54 = vmul.f32 %v2101_v51, %v126_v53 }
 0x1fc   :  { %v128_v55 = vmul.f32 0.5, %v127_v54 }
 0x1fe   :  { %v129_v56 = vsub.f32 1.5, %v128_v55 }
 0x1ff   :  { %v2103_v57 = vpop.eup %2102 }
 0x200   :  { %v130_v58 = vmul.f32 %v2101_v51, %v129_v56  ;;  %v136_v59 = vmul.f32 %v2103_v57, %v124_v52  ;;  %vm142_vm9 = vweird.f32 %v2103_v57 }
 0x201   :  { %vm143_vm11 = vmor %vm141_vm10, %vm142_vm9 }
 0x202   :  { %v134_v61 = vsel %vm133_vm8, %v2101_v51, %v130_v58  ;;  %v137_v62 = vmul.f32 %v2103_v57, %v136_v59 }
 0x203   :  { %v145_v63 = vmul.f32 %v134_v61, %v111_v34 }
 0x204   :  { %v138_v1 = vmul.f32 0.5, %v137_v62 }
 0x205   :  { %v148_v2 = vmul.f32 %v2078_v60, %v145_v63 }
 0x206   :  { %v139_v3 = vsub.f32 1.5, %v138_v1 }
 0x207   :  { %v2308_v4 = vadd.f32 %v2079_v0, %v148_v2 }
 0x208   :  { %v140_v5 = vmul.f32 %v2103_v57, %v139_v3 }
 0x209   :  { %1934 = vmatmul.msk.f32.vlgmr.msra.gmra.mxu1 %vm95_vm4, %v2308_v4 }
 0x20a   :  { %v144_v6 = vsel %vm143_vm11, %v2103_v57, %v140_v5  ;;  %vm897_vm11 = vcmask 523264  }
 0x20b   :  { %v146_v7 = vmul.f32 %v144_v6, %v112_v39 }
 0x20d   :  { %v149_v8 = vmul.f32 %v2078_v60, %v146_v7 }
 0x20f   :  { %v2312_v9 = vadd.f32 %v2079_v0, %v149_v8 }
 0x211   :  { %1935 = vmatmul.msk.f32.gmra.mxu1 %vm95_vm4, %v2312_v9 }
 0x286   :  { %v192_v11 = vpop.f32.mrf.mxu1 }
 0x287   :  { %v193_v12 = vadd.f32 %v2080_v10, %v192_v11 }
 0x289   :  { %200 = vrot.lane.b32.xlu1 %v193_v12, %s2252_s0 }
 0x28e   :  { %v195_v13 = vpop.f32.mrf.mxu1 }
 0x28f   :  { %v196_v14 = vadd.f32 %v2080_v10, %v195_v13 }
 0x291   :  { %202 = vrot.lane.b32.xlu0 %v196_v14, %s2252_s0  ;;  %v2339_v42 = vpack.i.bf16 %v193_v12, %v196_v14 }
 0x2fb   :  { %v201_v16 = vpop.permute.xlu1 %200 }
 0x303   :  { %v203_v15 = vpop.permute.xlu0 %202 }
 0x304   :  { %1936 = vmatpush.xpose.msk.msra.mxu2 %vm204_vm12, %v203_v15 }
 0x308   :  { %1937 = vmatpush.xpose.msk.msra.mxu2 %vm204_vm12, %v201_v16 }
 0x30b   :  { %1938 = vmatmul.msk.f32.vlgmr.msra.gmra.mxu2 %vm204_vm12, %v193_v12 }
 0x313   :  { %1939 = vmatmul.msk.f32.gmra.mxu2 %vm204_vm12, %v196_v14 }
 0x38e   :  { %v230_v23 = vpop.f32.mrf.mxu2 }
 0x38f   :  { %v231_v24 = vadd.f32 %v230_v23, %v2325_v22 }
 0x391   :  { %v237_v26 = vsel %vm236_vm13, %v231_v24, -inf }
 0x392   :  { %238 = vmax.xlane.f32.xlu2 %v237_v26 }
 0x396   :  { %v233_v28 = vpop.f32.mrf.mxu2 }
 0x397   :  { %v234_v29 = vadd.f32 %v233_v28, %v2329_v27 }
 0x399   :  { %v240_v30 = vsel %vm236_vm13, %v234_v29, -inf }
 0x39a   :  { %241 = vmax.xlane.f32.xlu0 %v240_v30 }
 0x3ae   :  { %295 = vrot.lane.b32.xlu0 %v193_v12, %s2253_s1 }
 0x3b6   :  { %450 = vrot.lane.b32.xlu0 %v193_v12, %s2254_s27 }
 0x3be   :  { %582 = vrot.lane.b32.xlu0 %v193_v12, %s2255_s28 }
 0x3c6   :  { %578 = vrot.lane.b32.xlu0 %v193_v12, %s2256_s29 }
 0x405   :  { %v239_v32 = vpop.xlane.xlu2 %238 }
 0x406   :  { %v243_v33 = vsub.f32 %v231_v24, %v239_v32 }
 0x408   :  { %v245_v34 = vmul.f32 1.442695, %v243_v33 }
 0x40a   :  { %2104 = vpow2.f32 %v245_v34 }
 0x40d   :  { %v242_v35 = vpop.xlane.xlu0 %241 }
 0x40e   :  { %v244_v36 = vsub.f32 %v234_v29, %v242_v35 }
 0x410   :  { %v2105_v37 = vpop.eup %2104  ;;  %v247_v38 = vmul.f32 1.442695, %v244_v36 }
 0x411   :  { %v249_v39 = vsel %vm236_vm13, %v2105_v37, 0.0 }
 0x412   :  { %2106 = vpow2.f32 %v247_v38  ;;  %250 = vadd.xlane.f32.xlu2 %v249_v39 }
 0x418   :  { %v2107_v40 = vpop.eup %2106 }
 0x419   :  { %v252_v41 = vsel %vm236_vm13, %v2107_v40, 0.0 }
 0x41a   :  { %253 = vadd.xlane.f32.xlu1 %v252_v41 }
 0x420   :  { %v296_v55 = vpop.permute.xlu0 %295 }
 0x428   :  { %v451_v58 = vpop.permute.xlu0 %450 }
 0x42a   :  { %2039 = vrot.lane.b32.xlu2 %v2339_v42, %s2257_s30 }
 0x430   :  { %v583_v61 = vpop.permute.xlu0 %582 }
 0x432   :  { %301 = vrot.lane.b32.xlu2 %v196_v14, %s2258_s5 }
 0x433   :  { %454 = vrot.lane.b32.xlu1 %v193_v12, %s2259_s6 }
 0x438   :  { %v579_v1 = vpop.permute.xlu0 %578 }
 0x43a   :  { %299 = vrot.lane.b32.xlu2 %v193_v12, %s2258_s5 }
 0x442   :  { %297 = vrot.lane.b32.xlu2 %v196_v14, %s2253_s1 }
 0x44a   :  { %456 = vrot.lane.b32.xlu2 %v196_v14, %s2259_s6 }
 0x452   :  { %584 = vrot.lane.b32.xlu2 %v196_v14, %s2255_s28 }
 0x45a   :  { %452 = vrot.lane.b32.xlu2 %v196_v14, %s2254_s27 }
 0x462   :  { %580 = vrot.lane.b32.xlu2 %v196_v14, %s2256_s29 }
 0x485   :  { %v251_v43 = vpop.xlane.xlu2 %250 }
 0x486   :  { %2108 = vrcp.f32 %v251_v43 }
 0x48c   :  { %v2109_v46 = vpop.eup %2108 }
 0x48d   :  { %v254_v44 = vpop.xlane.xlu1 %253  ;;  %v2040_v45 = vpop.permute.xlu2 %2039  ;;  %v257_v49 = vmul.f32 %v2109_v46, %v2105_v37 }
 0x48e   :  { %v2041_v47 = vunpack.i.l.bf16 %v2040_v45  ;;  %2110 = vrcp.f32 %v254_v44  ;;  %v2042_v48 = vunpack.i.h.bf16 %v2040_v45 }
 0x490   :  { %285 = vmatpush.msra.mxu3 %v2041_v47 }
 0x492   :  { %286 = vmatpush.msra.mxu3 %v2042_v48 }
 0x493   :  { %1940 = vmatmul.msk.f32.vlgmr.msra.gmra.mxu3 %vm236_vm13, %v257_v49 }
 0x494   :  { %v2111_v52 = vpop.eup %2110 }
 0x495   :  { %v302_v51 = vpop.permute.xlu2 %301  ;;  %v258_v53 = vmul.f32 %v2111_v52, %v2107_v40 }
 0x496   :  { %1942 = vmatpush.xpose.msk.msrb.mxu3 %vm204_vm12, %v302_v51 }
 0x49b   :  { %1941 = vmatmul.msk.f32.gmra.mxu3 %vm236_vm13, %v258_v53 }
 0x49d   :  { %v300_v54 = vpop.permute.xlu2 %299 }
 0x49e   :  { %1943 = vmatpush.xpose.msk.msrb.mxu3 %vm204_vm12, %v300_v54 }
 0x4a3   :  { %1944 = vmatmul.msk.f32.vlgmr.msrb.gmra.mxu3 %vm204_vm12, %v296_v55 }
 0x4a5   :  { %v298_v56 = vpop.permute.xlu2 %297  ;;  %v455_v59 = vpop.permute.xlu1 %454 }
 0x4ab   :  { %1945 = vmatmul.msk.f32.gmra.mxu3 %vm204_vm12, %v298_v56 }
 0x4ad   :  { %v457_v57 = vpop.permute.xlu2 %456 }
 0x4ae   :  { %1952 = vmatpush.xpose.msk.msra.mxu3 %vm204_vm12, %v457_v57 }
 0x4b2   :  { %1953 = vmatpush.xpose.msk.msra.mxu3 %vm204_vm12, %v455_v59 }
 0x4b5   :  { %v585_v60 = vpop.permute.xlu2 %584  ;;  %1954 = vmatmul.msk.f32.vlgmr.msra.gmra.mxu3 %vm204_vm12, %v451_v58 }
 0x4b6   :  { %1960 = vmatpush.xpose.msk.msra.mxu0 %vm204_vm12, %v585_v60 }
 0x4ba   :  { %1961 = vmatpush.xpose.msk.msra.mxu0 %vm204_vm12, %v583_v61 }
 0x4bd   :  { %v453_v62 = vpop.permute.xlu2 %452 }
 0x4be   :  { %1955 = vmatmul.msk.f32.gmra.mxu3 %vm204_vm12, %v453_v62 }
 0x4c5   :  { %v581_v6 = vpop.permute.xlu2 %580 }
 0x516   :  { %v288_v63 = vpop.f32.mrf.mxu3 }
 0x517   :  { %1950 = vmatmul.msk.f32.vlgmr.msrb.gmra.mxu0 %vm204_vm12, %v288_v63 }
 0x51e   :  { %v291_v0 = vpop.f32.mrf.mxu3 }
 0x51f   :  { %1951 = vmatmul.msk.f32.gmra.mxu0 %vm204_vm12, %v291_v0 }
 0x526   :  { %v328_v2 = vpop.f32.mrf.mxu3 }
 0x527   :  { %v329_v3 = vadd.f32 %v328_v2, %v2325_v22  ;;  %1962 = vmatmul.msk.f32.vlgmr.msra.gmra.mxu0 %vm204_vm12, %v579_v1 }
 0x529   :  { %v334_v5 = vsel %vm236_vm13, %v329_v3, -inf }
 0x52a   :  { %335 = vmax.xlane.f32.xlu1 %v334_v5 }
 0x52e   :  { %v331_v7 = vpop.f32.mrf.mxu3 }
 0x52f   :  { %v332_v8 = vadd.f32 %v331_v7, %v2329_v27  ;;  %1963 = vmatmul.msk.f32.gmra.mxu0 %vm204_vm12, %v581_v6 }
 0x531   :  { %v337_v10 = vsel %vm236_vm13, %v332_v8, -inf }
 0x532   :  { %338 = vmax.xlane.f32.xlu0 %v337_v10 }
 0x538   :  { %v483_v11 = vpop.f32.mrf.mxu3 }
 0x539   :  { %v484_v12 = vadd.f32 %v483_v11, %v2325_v22 }
 0x53b   :  { %v489_v13 = vsel %vm236_vm13, %v484_v12, -inf }
 0x53c   :  { %490 = vmax.xlane.f32.xlu2 %v489_v13 }
 0x541   :  { %v486_v14 = vpop.f32.mrf.mxu3 }
 0x542   :  { %v487_v15 = vadd.f32 %v486_v14, %v2329_v27 }
 0x544   :  { %v492_v16 = vsel %vm236_vm13, %v487_v15, -inf }
 0x545   :  { %493 = vmax.xlane.f32.xlu0 %v492_v16 }
 0x559   :  { %2044 = vrot.lane.b32.xlu0 %v2339_v42, %s2260_s7 }
 0x561   :  { %2054 = vrot.lane.b32.xlu0 %v2339_v42, %s2261_s8 }
 0x594   :  { %v2379_v17 = vpop.f32.mrf.mxu0 }
 0x59c   :  { %v2381_v18 = vpop.f32.mrf.mxu0 }
 0x59d   :  { %v336_v19 = vpop.xlane.xlu1 %335 }
 0x59e   :  { %v340_v20 = vsub.f32 %v329_v3, %v336_v19  ;;  %v391_v19 = vld [vmem:[#allocation2 + $0xa0] sm:$0xff] }
 0x59f   :  { %413 = vmatpush.msrb.mxu2 %v391_v19 }
 0x5a0   :  { %v342_v21 = vmul.f32 1.442695, %v340_v20 }
 0x5a2   :  { %2112 = vpow2.f32 %v342_v21 }
 0x5a4   :  { %v611_v23 = vpop.f32.mrf.mxu0 }
 0x5a5   :  { %v612_v24 = vadd.f32 %v611_v23, %v2325_v22  ;;  %v339_v25 = vpop.xlane.xlu0 %338 }
 0x5a6   :  { %v341_v26 = vsub.f32 %v332_v8, %v339_v25  ;;  %v546_v25 = vld [vmem:[#allocation2 + $0xa8] sm:$0xff] }
 0x5a7   :  { %v617_v28 = vsel %vm236_vm13, %v612_v24, -inf  ;;  %568 = vmatpush.msra.mxu2 %v546_v25  ;;  %v2083_v25 = vld [vmem:[#allocation2 + $0xc8] ss:$0 sm:$0xff] }
 0x5a8   :  { %618 = vmax.xlane.f32.xlu1 %v617_v28  ;;  %v344_v29 = vmul.f32 1.442695, %v341_v26  ;;  %v2113_v30 = vpop.eup %2112 }
 0x5a9   :  { %v346_v36 = vsel %vm236_vm13, %v2113_v30, 0.0 }
 0x5aa   :  { %2114 = vpow2.f32 %v344_v29 }
 0x5ac   :  { %v614_v32 = vpop.f32.mrf.mxu0 }
 0x5ad   :  { %v615_v33 = vadd.f32 %v614_v32, %v2329_v27  ;;  %v674_v32 = vld [vmem:[#allocation2 + $0xb0] sm:$0xff] }
 0x5af   :  { %v491_v34 = vpop.xlane.xlu2 %490  ;;  %v620_v35 = vsel %vm236_vm13, %v615_v33, -inf }
 0x5b0   :  { %v495_v37 = vsub.f32 %v484_v12, %v491_v34  ;;  %621 = vmax.xlane.f32.xlu2 %v620_v35  ;;  %347 = vadd.xlane.f32.xlu1 %v346_v36  ;;  %v2115_v39 = vpop.eup %2114 }
 0x5b1   :  { %v349_v40 = vsel %vm236_vm13, %v2115_v39, 0.0 }
 0x5b2   :  { %v497_v38 = vmul.f32 1.442695, %v495_v37 }
 0x5b4   :  { %2116 = vpow2.f32 %v497_v38 }
 0x5b8   :  { %350 = vadd.xlane.f32.xlu2 %v349_v40  ;;  %v494_v41 = vpop.xlane.xlu0 %493 }
 0x5b9   :  { %v496_v43 = vsub.f32 %v487_v15, %v494_v41 }
 0x5ba   :  { %v2117_v44 = vpop.eup %2116 }
 0x5bb   :  { %v499_v45 = vmul.f32 1.442695, %v496_v43  ;;  %v501_v46 = vsel %vm236_vm13, %v2117_v44, 0.0  ;;  %v2081_v43 = vld [vmem:[#allocation2 + $0xb8] ss:$0 sm:$0xff] }
 0x5bc   :  { %502 = vadd.xlane.f32.xlu1 %v501_v46 }
 0x5bd   :  { %2118 = vpow2.f32 %v499_v45 }
 0x5c3   :  { %v2119_v47 = vpop.eup %2118 }
 0x5c4   :  { %v504_v48 = vsel %vm236_vm13, %v2119_v47, 0.0 }
 0x5c5   :  { %505 = vadd.xlane.f32.xlu2 %v504_v48 }
 0x5cb   :  { %v2045_v49 = vpop.permute.xlu0 %2044 }
 0x5cc   :  { %v2046_v50 = vunpack.i.l.bf16 %v2045_v49  ;;  %v2047_v51 = vunpack.i.h.bf16 %v2045_v49 }
 0x5ce   :  { %382 = vmatpush.msrb.mxu1 %v2046_v50 }
 0x5d0   :  { %383 = vmatpush.msrb.mxu1 %v2047_v51 }
 0x5d3   :  { %v2055_v52 = vpop.permute.xlu0 %2054 }
 0x5d4   :  { %v2056_v53 = vunpack.i.l.bf16 %v2055_v52  ;;  %v2057_v54 = vunpack.i.h.bf16 %v2055_v52 }
 0x5d5   :  { %2049 = vrot.lane.b32.xlu1 %v2339_v42, %s2262_s9 }
 0x5d6   :  { %665 = vmatpush.msrb.mxu3 %v2056_v53 }
 0x5d8   :  { %666 = vmatpush.msrb.mxu3 %v2057_v54 }
 0x61b   :  { %v619_v55 = vpop.xlane.xlu1 %618 }
 0x61c   :  { %v623_v56 = vsub.f32 %v612_v24, %v619_v55 }
 0x61e   :  { %v625_v57 = vmul.f32 1.442695, %v623_v56 }
 0x620   :  { %2120 = vpow2.f32 %v625_v57 }
 0x623   :  { %v622_v58 = vpop.xlane.xlu2 %621  ;;  %v348_v59 = vpop.xlane.xlu1 %347 }
 0x624   :  { %v624_v60 = vsub.f32 %v615_v33, %v622_v58  ;;  %2122 = vrcp.f32 %v348_v59 }
 0x626   :  { %v2121_v61 = vpop.eup %2120  ;;  %v627_v62 = vmul.f32 1.442695, %v624_v60 }
 0x627   :  { %v629_v63 = vsel %vm236_vm13, %v2121_v61, 0.0 }
 0x628   :  { %2124 = vpow2.f32 %v627_v62  ;;  %630 = vadd.xlane.f32.xlu2 %v629_v63 }
 0x62a   :  { %v2123_v0 = vpop.eup %2122 }
 0x62b   :  { %v351_v1 = vpop.xlane.xlu2 %350  ;;  %v354_v42 = vmul.f32 %v2123_v0, %v2113_v30  ;;  %v766_v0 = vld [vmem:[#allocation2 + $0xe0] sm:$0xff] }
 0x62c   :  { %2126 = vrcp.f32 %v351_v1  ;;  %v765_v1 = vld [vmem:[#allocation2 + $0xd8] sm:$0xff] }
 0x62d   :  { %1946 = vmatmul.msk.f32.vlgmr.msrb.gmra.mxu1 %vm236_vm13, %v354_v42  ;;  %v764_v42 = vld [vmem:[#allocation2 + $0xd0] sm:$0xff] }
 0x62e   :  { %v2125_v2 = vpop.eup %2124 }
 0x62f   :  { %v632_v3 = vsel %vm236_vm13, %v2125_v2, 0.0  ;;  %v503_v7 = vpop.xlane.xlu1 %502 }
 0x630   :  { %633 = vadd.xlane.f32.xlu2 %v632_v3  ;;  %2128 = vrcp.f32 %v503_v7 }
 0x632   :  { %v2127_v5 = vpop.eup %2126 }
 0x633   :  { %v355_v6 = vmul.f32 %v2127_v5, %v2115_v39 }
 0x635   :  { %1947 = vmatmul.msk.f32.gmra.mxu1 %vm236_vm13, %v355_v6 }
 0x636   :  { %v2129_v11 = vpop.eup %2128 }
 0x637   :  { %v509_v14 = vmul.f32 %v2129_v11, %v2117_v44 }
 0x638   :  { %v506_v8 = vpop.xlane.xlu2 %505 }
 0x639   :  { %2130 = vrcp.f32 %v506_v8 }
 0x63f   :  { %v2131_v15 = vpop.eup %2130 }
 0x640   :  { %v510_v16 = vmul.f32 %v2131_v15, %v2119_v47 }
 0x647   :  { %v2050_v10 = vpop.permute.xlu1 %2049 }
 0x648   :  { %v2051_v12 = vunpack.i.l.bf16 %v2050_v10  ;;  %v2052_v13 = vunpack.i.h.bf16 %v2050_v10 }
 0x64a   :  { %537 = vmatpush.msra.mxu1 %v2051_v12 }
 0x64c   :  { %538 = vmatpush.msra.mxu1 %v2052_v13 }
 0x64d   :  { %1956 = vmatmul.msk.f32.vlgmr.msra.gmra.mxu1 %vm236_vm13, %v509_v14 }
 0x64e   :  { %696 = vmatpush.msrb.mxu1 %v674_v32 }
 0x655   :  { %1957 = vmatmul.msk.f32.gmra.mxu1 %vm236_vm13, %v510_v16 }
 0x69b   :  { %v631_v20 = vpop.xlane.xlu2 %630 }
 0x69c   :  { %2132 = vrcp.f32 %v631_v20  ;;  %v2082_v20 = vld [vmem:[#allocation2 + $0xc0] ss:$0 sm:$0xff] }
 0x6a2   :  { %v2133_v21 = vpop.eup %2132 }
 0x6a3   :  { %v637_v23 = vmul.f32 %v2133_v21, %v2121_v61  ;;  %v634_v24 = vpop.xlane.xlu2 %633 }
 0x6a4   :  { %2134 = vrcp.f32 %v634_v24 }
 0x6a5   :  { %1964 = vmatmul.msk.f32.vlgmr.msrb.gmra.mxu3 %vm236_vm13, %v637_v23 }
 0x6aa   :  { %v2135_v26 = vpop.eup %2134  ;;  %v385_v28 = vpop.f32.mrf.mxu1 }
 0x6ab   :  { %1948 = vmatmul.msk.f32.vlgmr.msrb.gmra.mxu2 %vm204_vm12, %v385_v28  ;;  %v638_v29 = vmul.f32 %v2135_v26, %v2125_v2 }
 0x6ad   :  { %1965 = vmatmul.msk.f32.gmra.mxu3 %vm236_vm13, %v638_v29 }
 0x6b2   :  { %v388_v30 = vpop.f32.mrf.mxu1 }
 0x6b3   :  { %1949 = vmatmul.msk.f32.gmra.mxu2 %vm204_vm12, %v388_v30 }
 0x6ca   :  { %v540_v33 = vpop.f32.mrf.mxu1 }
 0x6cb   :  { %1958 = vmatmul.msk.f32.vlgmr.msra.gmra.mxu2 %vm204_vm12, %v540_v33 }
 0x6d2   :  { %v543_v34 = vpop.f32.mrf.mxu1 }
 0x6d3   :  { %1959 = vmatmul.msk.f32.gmra.mxu2 %vm204_vm12, %v543_v34 }
 0x728   :  { %v668_v35 = vpop.f32.mrf.mxu3 }
 0x729   :  { %1966 = vmatmul.msk.f32.vlgmr.msrb.gmra.mxu1 %vm204_vm12, %v668_v35 }
 0x72e   :  { %v415_v37 = vpop.f32.mrf.mxu2 }
 0x72f   :  { %v445_v40 = vadd.f32 %v2379_v17, %v415_v37  ;;  %v2084_v37 = vld [vmem:[#allocation2 + $0xf0] ss:$0 sm:$0xff] }
 0x730   :  { %v671_v36 = vpop.f32.mrf.mxu3 }
 0x731   :  { %1967 = vmatmul.msk.f32.gmra.mxu1 %vm204_vm12, %v671_v36 }
 0x736   :  { %v418_v38 = vpop.f32.mrf.mxu2 }
 0x737   :  { %v448_v48 = vadd.f32 %v2381_v18, %v418_v38 }
 0x74e   :  { %v570_v39 = vpop.f32.mrf.mxu2 }
 0x74f   :  { %v576_v41 = vadd.f32 %v570_v39, %v445_v40 }
 0x756   :  { %v573_v47 = vpop.f32.mrf.mxu2 }
 0x757   :  { %v577_v50 = vadd.f32 %v573_v47, %v448_v48 }
 0x7a6   :  { %v698_v44 = vpop.f32.mrf.mxu1 }
 0x7a7   :  { %v704_v45 = vadd.f32 %v698_v44, %v576_v41 }
 0x7a9   :  { %v708_v46 = vadd.f32 %v2081_v43, %v704_v45  ;;  %v894_v45 = vld [vmem:[#allocation2 + $0x130] sm:$0xff] }
 0x7aa   :  { %912 = vmatpush.msrb.mxu0 %v894_v45 }
 0x7ab   :  { %v710_v49 = vadd.f32 %v708_v46, %v2308_v4 }
 0x7ad   :  { %v714_v51 = vsel %vm95_vm4, %v710_v49, 0.0 }
 0x7ae   :  { %715 = vadd.xlane.f32.xlu0 %v714_v51  ;;  %v701_v52 = vpop.f32.mrf.mxu1 }
 0x7af   :  { %v705_v53 = vadd.f32 %v701_v52, %v577_v50 }
 0x7b1   :  { %v709_v54 = vadd.f32 %v2081_v43, %v705_v53  ;;  %v892_v53 = vld [vmem:[#allocation2 + $0x120] sm:$0xff] }
 0x7b3   :  { %v711_v55 = vadd.f32 %v709_v54, %v2312_v9  ;;  %v767_v9 = vld [vmem:[#allocation2 + $0xe8] sm:$0xff] }
 0x7b4   :  { %788 = vmatpush.msrb.mxu2 %v767_v9 }
 0x7b5   :  { %v717_v17 = vsel %vm95_vm4, %v711_v55, 0.0 }
 0x7b6   :  { %718 = vadd.xlane.f32.xlu2 %v717_v17  ;;  %789 = vmatpush.msrb.mxu2 %v766_v0 }
 0x7b8   :  { %790 = vmatpush.msrb.mxu2 %v765_v1 }
 0x7ba   :  { %791 = vmatpush.msrb.mxu2 %v764_v42  ;;  %v888_v42 = vld [vmem:[#allocation2 + $0x100] sm:$0xff] }
 0x821   :  { %v716_v56 = vpop.xlane.xlu0 %715 }
 0x822   :  { %v720_v57 = vmul.f32 %v716_v56, %v2300_v31  ;;  %v891_v56 = vld [vmem:[#allocation2 + $0x118] sm:$0xff] }
 0x824   :  { %v722_v58 = vsub.f32 %v710_v49, %v720_v57  ;;  %v893_v49 = vld [vmem:[#allocation2 + $0x128] sm:$0xff] }
 0x825   :  { %913 = vmatpush.msrb.mxu0 %v893_v49 }
 0x826   :  { %v724_v59 = vmul.f32 %v722_v58, %v722_v58 }
 0x827   :  { %914 = vmatpush.msrb.mxu0 %v892_v53 }
 0x828   :  { %v726_v18 = vsel %vm95_vm4, %v724_v59, 0.0 }
 0x829   :  { %727 = vadd.xlane.f32.xlu1 %v726_v18  ;;  %v719_v4 = vpop.xlane.xlu2 %718  ;;  %915 = vmatpush.msrb.mxu0 %v891_v56  ;;  %v890_v18 = vld [vmem:[#allocation2 + $0x110] sm:$0xff] }
 0x82a   :  { %v721_v60 = vmul.f32 %v719_v4, %v2300_v31 }
 0x82b   :  { %916 = vmatpush.msrb.mxu0 %v890_v18 }
 0x82c   :  { %v723_v61 = vsub.f32 %v711_v55, %v721_v60 }
 0x82e   :  { %v725_v62 = vmul.f32 %v723_v61, %v723_v61 }
 0x830   :  { %v729_v63 = vsel %vm95_vm4, %v725_v62, 0.0  ;;  %v889_v62 = vld [vmem:[#allocation2 + $0x108] sm:$0xff] }
 0x831   :  { %730 = vadd.xlane.f32.xlu2 %v729_v63  ;;  %917 = vmatpush.msrb.mxu0 %v889_v62 }
 0x833   :  { %918 = vmatpush.msrb.mxu0 %v888_v42 }
 0x89c   :  { %v728_v2 = vpop.xlane.xlu1 %727 }
 0x89d   :  { %v732_v3 = vmul.f32 %v728_v2, %v2300_v31 }
 0x89f   :  { %v734_v5 = vadd.f32 1e-12, %v732_v3 }
 0x8a1   :  { %2136 = vrsqrt.f32 %v734_v5  ;;  %vm742_vm15 = vweird.f32 %v734_v5 }
 0x8a4   :  { %v731_v6 = vpop.xlane.xlu2 %730 }
 0x8a5   :  { %v733_v7 = vmul.f32 %v731_v6, %v2300_v31  ;;  %v887_v6 = vld [vmem:[#allocation2 + $0xf8] sm:$0xff] }
 0x8a6   :  { %919 = vmatpush.msrb.mxu0 %v887_v6 }
 0x8a7   :  { %v2137_v8 = vpop.eup %2136  ;;  %v735_v10 = vadd.f32 1e-12, %v733_v7 }
 0x8a8   :  { %v737_v11 = vmul.f32 %v2137_v8, %v734_v5  ;;  %vm743_vm14 = vweird.f32 %v2137_v8 }
 0x8a9   :  { %2138 = vrsqrt.f32 %v735_v10  ;;  %vm744_vm0 = vmor %vm742_vm15, %vm743_vm14  ;;  %vm752_vm2 = vweird.f32 %v735_v10 }
 0x8aa   :  { %v738_v12 = vmul.f32 %v2137_v8, %v737_v11 }
 0x8ac   :  { %v739_v13 = vmul.f32 0.5, %v738_v12 }
 0x8ae   :  { %v740_v14 = vsub.f32 1.5, %v739_v13 }
 0x8af   :  { %v2139_v15 = vpop.eup %2138 }
 0x8b0   :  { %v741_v16 = vmul.f32 %v2137_v8, %v740_v14  ;;  %v747_v19 = vmul.f32 %v2139_v15, %v735_v10  ;;  %vm753_vm1 = vweird.f32 %v2139_v15 }
 0x8b1   :  { %vm754_vm3 = vmor %vm752_vm2, %vm753_vm1 }
 0x8b2   :  { %v745_v21 = vsel %vm744_vm0, %v2137_v8, %v741_v16  ;;  %v748_v23 = vmul.f32 %v2139_v15, %v747_v19 }
 0x8b3   :  { %v756_v24 = vmul.f32 %v745_v21, %v722_v58 }
 0x8b4   :  { %v749_v26 = vmul.f32 0.5, %v748_v23 }
 0x8b5   :  { %v759_v28 = vmul.f32 %v2082_v20, %v756_v24 }
 0x8b6   :  { %v750_v29 = vsub.f32 1.5, %v749_v26 }
 0x8b7   :  { %v2419_v30 = vadd.f32 %v2083_v25, %v759_v28 }
 0x8b8   :  { %v751_v32 = vmul.f32 %v2139_v15, %v750_v29 }
 0x8b9   :  { %1968 = vmatmul.msk.f32.vlgmr.msrb.gmra.mxu2 %vm95_vm4, %v2419_v30 }
 0x8ba   :  { %v755_v33 = vsel %vm754_vm3, %v2139_v15, %v751_v32 }
 0x8bb   :  { %v757_v34 = vmul.f32 %v755_v33, %v723_v61 }
 0x8bd   :  { %v760_v35 = vmul.f32 %v2082_v20, %v757_v34 }
 0x8bf   :  { %v2423_v36 = vadd.f32 %v2083_v25, %v760_v35 }
 0x8c1   :  { %1969 = vmatmul.msk.f32.gmra.mxu2 %vm95_vm4, %v2423_v36 }
 0x93c   :  { %v793_v38 = vpop.f32.mrf.mxu2 }
 0x93d   :  { %v2427_v39 = vadd.f32 %v2084_v37, %v793_v38 }
 0x93f   :  { %v2430_v40 = vmul.f32 0.70710677, %v2427_v39 }
 0x941   :  { %v803_v41 = vmul.f32 %v2430_v40, %v2430_v40 }
 0x943   :  { %v804_v43 = vmin.f32 %v803_v41, 16.0 }
 0x944   :  { %v796_v44 = vpop.f32.mrf.mxu2 }
 0x945   :  { %v805_v46 = vmul.f32 2.1237322e-06, %v804_v43  ;;  %v816_v47 = vmul.f32 3.8918573e-05, %v804_v43  ;;  %v2434_v48 = vadd.f32 %v2084_v37, %v796_v44 }
 0x947   :  { %v806_v50 = vadd.f32 0.00028619796, %v805_v46  ;;  %v817_v51 = vadd.f32 0.001143296, %v816_v47  ;;  %v2437_v52 = vmul.f32 0.70710677, %v2434_v48 }
 0x948   :  { %v800_v42 = vmul.f32 0.5, %v2434_v48 }
 0x949   :  { %v807_v54 = vmul.f32 %v806_v50, %v804_v43  ;;  %v818_v55 = vmul.f32 %v817_v51, %v804_v43  ;;  %v843_v17 = vmul.f32 %v2437_v52, %v2437_v52 }
 0x94b   :  { %v819_v57 = vadd.f32 0.014752088, %v818_v55  ;;  %v808_v58 = vadd.f32 0.0036580483, %v807_v54  ;;  %v844_v59 = vmin.f32 %v843_v17, 16.0 }
 0x94d   :  { %v820_v4 = vmul.f32 %v819_v57, %v804_v43  ;;  %v845_v60 = vmul.f32 2.1237322e-06, %v844_v59  ;;  %v856_v61 = vmul.f32 3.8918573e-05, %v844_v59  ;;  %v809_v9 = vmul.f32 %v808_v58, %v804_v43 }
 0x94f   :  { %v821_v63 = vadd.f32 0.112945676, %v820_v4  ;;  %v846_v0 = vadd.f32 0.00028619796, %v845_v60  ;;  %v857_v1 = vadd.f32 0.001143296, %v856_v61 }
 0x950   :  { %v810_v8 = vadd.f32 0.05243302, %v809_v9  ;;  %v799_v4 = vmul.f32 0.5, %v2427_v39 }
 0x951   :  { %v822_v2 = vmul.f32 %v821_v63, %v804_v43  ;;  %v847_v3 = vmul.f32 %v846_v0, %v844_v59  ;;  %v858_v5 = vmul.f32 %v857_v1, %v844_v59 }
 0x952   :  { %v811_v15 = vmul.f32 %v810_v8, %v804_v43 }
 0x953   :  { %v823_v7 = vadd.f32 0.4994258, %v822_v2  ;;  %v859_v10 = vadd.f32 0.014752088, %v858_v5  ;;  %v848_v12 = vadd.f32 0.0036580483, %v847_v3 }
 0x954   :  { %v812_v21 = vadd.f32 0.18741608, %v811_v15  ;;  %v2085_v3 = vld [vmem:[#allocation2 + $0x138] ss:$0 sm:$0xff] }
 0x955   :  { %v824_v11 = vmul.f32 %v823_v7, %v804_v43  ;;  %v860_v13 = vmul.f32 %v859_v10, %v844_v59  ;;  %v849_v19 = vmul.f32 %v848_v12, %v844_v59 }
 0x956   :  { %v813_v28 = vmul.f32 %v812_v21, %v804_v43 }
 0x957   :  { %v825_v14 = vadd.f32 1.0, %v824_v11  ;;  %v861_v16 = vadd.f32 0.112945676, %v860_v13  ;;  %v850_v24 = vadd.f32 0.05243302, %v849_v19 }
 0x958   :  { %v814_v37 = vadd.f32 1.1283791, %v813_v28 }
 0x959   :  { %2140 = vrcp.f32 %v825_v14  ;;  %v862_v20 = vmul.f32 %v861_v16, %v844_v59  ;;  %v851_v33 = vmul.f32 %v850_v24, %v844_v59  ;;  %v837_v35 = vand.u32 2147483648, %v825_v14  ;;  %v983_v24 = vld [vmem:[#allocation2 + $0x160] sm:$0xff] }
 0x95a   :  { %v835_v41 = vand.u32 2147483647, %v825_v14  ;;  %vm831_vm6 = vweird.f32 %v825_v14  ;;  %v815_v49 = vmul.f32 %v814_v37, %v2430_v40 }
 0x95b   :  { %v863_v23 = vadd.f32 0.4994258, %v862_v20  ;;  %v852_v44 = vadd.f32 0.18741608, %v851_v33  ;;  %v838_v46 = vor.u32 1.1754944e-38, %v837_v35 }
 0x95c   :  { %vm836_vm8 = vcmp.eq.f32.partialorder %v835_v41, 8.507059e+37 }
 0x95d   :  { %v864_v25 = vmul.f32 %v863_v23, %v844_v59  ;;  %v853_v51 = vmul.f32 %v852_v44, %v844_v59 }
 0x95f   :  { %v2141_v26 = vpop.eup %2140  ;;  %v865_v32 = vadd.f32 1.0, %v864_v25  ;;  %v854_v57 = vadd.f32 1.1283791, %v853_v51  ;;  %v982_v25 = vld [vmem:[#allocation2 + $0x158] sm:$0xff] }
 0x960   :  { %v827_v29 = vmul.f32 %v2141_v26, %v825_v14  ;;  %vm832_vm5 = vweird.f32 %v2141_v26 }
 0x961   :  { %2142 = vrcp.f32 %v865_v32  ;;  %vm833_vm7 = vmor %vm831_vm6, %vm832_vm5  ;;  %v877_v56 = vand.u32 2147483648, %v865_v32  ;;  %v875_v18 = vand.u32 2147483647, %v865_v32  ;;  %vm871_vm10 = vweird.f32 %v865_v32 }
 0x962   :  { %v828_v34 = vsub.f32 1.0, %v827_v29  ;;  %v855_v59 = vmul.f32 %v854_v57, %v2437_v52 }
 0x963   :  { %v878_v62 = vor.u32 1.1754944e-38, %v877_v56  ;;  %vm876_vm15 = vcmp.eq.f32.partialorder %v875_v18, 8.507059e+37 }
 0x964   :  { %v829_v38 = vmul.f32 %v2141_v26, %v828_v34 }
 0x966   :  { %v830_v45 = vadd.f32 %v2141_v26, %v829_v38 }
 0x967   :  { %v2143_v47 = vpop.eup %2142 }
 0x968   :  { %v834_v50 = vsel %vm833_vm7, %v2141_v26, %v830_v45  ;;  %v867_v53 = vmul.f32 %v2143_v47, %v865_v32  ;;  %vm872_vm9 = vweird.f32 %v2143_v47  ;;  %v981_v26 = vld [vmem:[#allocation2 + $0x150] sm:$0xff] }
 0x969   :  { %v839_v43 = vsel %vm836_vm8, %v838_v46, %v834_v50  ;;  %vm873_vm14 = vmor %vm871_vm10, %vm872_vm9 }
 0x96a   :  { %v840_v54 = vmul.f32 %v839_v43, %v815_v49  ;;  %v868_v55 = vsub.f32 1.0, %v867_v53  ;;  %v2086_v49 = vld [vmem:[#allocation2 + $0x140] ss:$0 sm:$0xff] }
 0x96c   :  { %v1970_v17 = vclamps-f32 %v840_v54, 1.0  ;;  %v869_v58 = vmul.f32 %v2143_v47, %v868_v55  ;;  %v2087_v54 = vld [vmem:[#allocation2 + $0x148] ss:$0 sm:$0xff] }
 0x96e   :  { %v883_v60 = vadd.f32 1.0, %v1970_v17  ;;  %v870_v61 = vadd.f32 %v2143_v47, %v869_v58 }
 0x970   :  { %v885_v40 = vmul.f32 %v883_v60, %v799_v4  ;;  %v874_v63 = vsel %vm873_vm14, %v2143_v47, %v870_v61 }
 0x971   :  { %v879_v9 = vsel %vm876_vm15, %v878_v62, %v874_v63 }
 0x972   :  { %1972 = vmatmul.msk.f32.vlgmr.msrb.gmra.mxu0 %vm897_vm11, %v885_v40  ;;  %v880_v0 = vmul.f32 %v879_v9, %v855_v59  ;;  %v2088_v40 = vld [vmem:[#allocation2 + $0x170] ss:$0 sm:$0xff] }
 0x974   :  { %v1971_v1 = vclamps-f32 %v880_v0, 1.0 }
 0x976   :  { %v884_v2 = vadd.f32 1.0, %v1971_v1 }
 0x978   :  { %v886_v39 = vmul.f32 %v884_v2, %v800_v42 }
 0x97a   :  { %1973 = vmatmul.msk.f32.gmra.mxu0 %vm897_vm11, %v886_v39 }
 0x9ef   :  { %v921_v5 = vpop.f32.mrf.mxu0 }
 0x9f0   :  { %v922_v6 = vadd.f32 %v2085_v3, %v921_v5 }
 0x9f2   :  { %v927_v7 = vadd.f32 %v922_v6, %v2419_v30 }
 0x9f4   :  { %v931_v52 = vsel %vm95_vm4, %v927_v7, 0.0 }
 0x9f5   :  { %932 = vadd.xlane.f32.xlu2 %v931_v52 }
 0x9f7   :  { %v924_v8 = vpop.f32.mrf.mxu0 }
 0x9f8   :  { %v925_v10 = vadd.f32 %v2085_v3, %v924_v8 }
 0x9fa   :  { %v928_v11 = vadd.f32 %v925_v10, %v2423_v36  ;;  %v984_v36 = vld [vmem:[#allocation2 + $0x168] sm:$0xff] }
 0x9fb   :  { %1005 = vmatpush.msra.mxu3 %v984_v36 }
 0x9fc   :  { %v934_v12 = vsel %vm95_vm4, %v928_v11, 0.0 }
 0x9fd   :  { %935 = vadd.xlane.f32.xlu2 %v934_v12  ;;  %1006 = vmatpush.msra.mxu3 %v983_v24 }
 0x9ff   :  { %1007 = vmatpush.msra.mxu3 %v982_v25 }
 0xa01   :  { %1008 = vmatpush.msra.mxu3 %v981_v26 }
 0xa68   :  { %v933_v48 = vpop.xlane.xlu2 %932 }
 0xa69   :  { %v937_v13 = vmul.f32 %v933_v48, %v2300_v31 }
 0xa6b   :  { %v939_v14 = vsub.f32 %v927_v7, %v937_v13 }
 0xa6d   :  { %v941_v15 = vmul.f32 %v939_v14, %v939_v14 }
 0xa6f   :  { %v943_v16 = vsel %vm95_vm4, %v941_v15, 0.0 }
 0xa70   :  { %944 = vadd.xlane.f32.xlu2 %v943_v16  ;;  %v936_v19 = vpop.xlane.xlu2 %935 }
 0xa71   :  { %v938_v30 = vmul.f32 %v936_v19, %v2300_v31 }
 0xa73   :  { %v940_v20 = vsub.f32 %v928_v11, %v938_v30 }
 0xa75   :  { %v942_v21 = vmul.f32 %v940_v20, %v940_v20 }
 0xa77   :  { %v946_v23 = vsel %vm95_vm4, %v942_v21, 0.0 }
 0xa78   :  { %947 = vadd.xlane.f32.xlu0 %v946_v23  ;;  %v1110_v23 = vld [vmem:[#allocation2 + $0x178] sm:$0xff] }
 0xae3   :  { %v945_v28 = vpop.xlane.xlu2 %944 }
 0xae4   :  { %v949_v29 = vmul.f32 %v945_v28, %v2300_v31 }
 0xae6   :  { %v951_v32 = vadd.f32 1e-12, %v949_v29 }
 0xae8   :  { %2144 = vrsqrt.f32 %v951_v32  ;;  %vm959_vm1 = vweird.f32 %v951_v32 }
 0xaeb   :  { %v948_v33 = vpop.xlane.xlu0 %947 }
 0xaec   :  { %v950_v34 = vmul.f32 %v948_v33, %v2300_v31 }
 0xaee   :  { %v2145_v35 = vpop.eup %2144  ;;  %v952_v38 = vadd.f32 1e-12, %v950_v34 }
 0xaef   :  { %v954_v37 = vmul.f32 %v2145_v35, %v951_v32  ;;  %vm960_vm0 = vweird.f32 %v2145_v35 }
 0xaf0   :  { %2146 = vrsqrt.f32 %v952_v38  ;;  %vm961_vm2 = vmor %vm959_vm1, %vm960_vm0  ;;  %vm969_vm5 = vweird.f32 %v952_v38 }
 0xaf1   :  { %v955_v41 = vmul.f32 %v2145_v35, %v954_v37 }
 0xaf3   :  { %v956_v44 = vmul.f32 0.5, %v955_v41 }
 0xaf5   :  { %v957_v45 = vsub.f32 1.5, %v956_v44 }
 0xaf6   :  { %v2147_v46 = vpop.eup %2146 }
 0xaf7   :  { %v958_v47 = vmul.f32 %v2145_v35, %v957_v45  ;;  %v964_v50 = vmul.f32 %v2147_v46, %v952_v38  ;;  %vm970_vm3 = vweird.f32 %v2147_v46 }
 0xaf8   :  { %vm971_vm6 = vmor %vm969_vm5, %vm970_vm3 }
 0xaf9   :  { %v962_v43 = vsel %vm961_vm2, %v2145_v35, %v958_v47  ;;  %v965_v53 = vmul.f32 %v2147_v46, %v964_v50 }
 0xafa   :  { %v973_v51 = vmul.f32 %v962_v43, %v939_v14 }
 0xafb   :  { %v966_v17 = vmul.f32 0.5, %v965_v53 }
 0xafc   :  { %v976_v55 = vmul.f32 %v2086_v49, %v973_v51 }
 0xafd   :  { %v967_v56 = vsub.f32 1.5, %v966_v17 }
 0xafe   :  { %v2457_v57 = vadd.f32 %v2087_v54, %v976_v55 }
 0xaff   :  { %v968_v58 = vmul.f32 %v2147_v46, %v967_v56 }
 0xb00   :  { %1974 = vmatmul.msk.f32.vlgmr.msra.gmra.mxu3 %vm95_vm4, %v2457_v57 }
 0xb01   :  { %v972_v18 = vsel %vm971_vm6, %v2147_v46, %v968_v58 }
 0xb02   :  { %v974_v4 = vmul.f32 %v972_v18, %v940_v20 }
 0xb04   :  { %v977_v60 = vmul.f32 %v2086_v49, %v974_v4 }
 0xb06   :  { %v2461_v61 = vadd.f32 %v2087_v54, %v977_v60 }
 0xb08   :  { %1975 = vmatmul.msk.f32.gmra.mxu3 %vm95_vm4, %v2461_v61 }
 0xb83   :  { %v1010_v62 = vpop.f32.mrf.mxu3 }
 0xb84   :  { %v1011_v59 = vadd.f32 %v2088_v40, %v1010_v62 }
 0xb86   :  { %1018 = vrot.lane.b32.xlu0 %v1011_v59, %s2252_s0 }
 0xb8b   :  { %v1013_v63 = vpop.f32.mrf.mxu3 }
 0xb8c   :  { %v1014_v9 = vadd.f32 %v2088_v40, %v1013_v63 }
 0xb8e   :  { %1020 = vrot.lane.b32.xlu2 %v1014_v9, %s2252_s0  ;;  %v2467_v0 = vpack.i.bf16 %v1011_v59, %v1014_v9 }
 0xb96   :  { %2059 = vrot.lane.b32.xlu2 %v2467_v0, %s2257_s30 }
 0xb9e   :  { %1115 = vrot.lane.b32.xlu2 %v1011_v59, %s2258_s5 }
 0xba6   :  { %1111 = vrot.lane.b32.xlu2 %v1011_v59, %s2253_s1 }
 0xbae   :  { %1400 = vrot.lane.b32.xlu2 %v1014_v9, %s2255_s28 }
 0xbb6   :  { %1113 = vrot.lane.b32.xlu2 %v1014_v9, %s2253_s1 }
 0xbbe   :  { %1398 = vrot.lane.b32.xlu2 %v1011_v59, %s2255_s28 }
 0xbc6   :  { %1266 = vrot.lane.b32.xlu2 %v1011_v59, %s2254_s27 }
 0xbce   :  { %1268 = vrot.lane.b32.xlu2 %v1014_v9, %s2254_s27 }
 0xbe8   :  { %v1021_v1 = vpop.permute.xlu2 %1020 }
 0xbe9   :  { %1976 = vmatpush.xpose.msk.msra.mxu1 %vm204_vm12, %v1021_v1 }
 0xbf0   :  { %v2060_v42 = vpop.permute.xlu2 %2059 }
 0xbf1   :  { %v2061_v2 = vunpack.i.l.bf16 %v2060_v42  ;;  %v2062_v39 = vunpack.i.h.bf16 %v2060_v42 }
 0xbf3   :  { %1101 = vmatpush.msra.mxu2 %v2061_v2 }
 0xbf5   :  { %1102 = vmatpush.msra.mxu2 %v2062_v39 }
 0xbf7   :  { %1258 = vmatpush.msrb.mxu2 %v1110_v23 }
 0xbf8   :  { %v1019_v3 = vpop.permute.xlu0 %1018  ;;  %v1116_v21 = vpop.permute.xlu2 %1115 }
 0xbf9   :  { %1977 = vmatpush.xpose.msk.msra.mxu1 %vm204_vm12, %v1019_v3 }
 0xbfc   :  { %1978 = vmatmul.msk.f32.vlgmr.msra.gmra.mxu1 %vm204_vm12, %v1011_v59 }
 0xc00   :  { %v1112_v36 = vpop.permute.xlu2 %1111 }
 0xc04   :  { %1979 = vmatmul.msk.f32.gmra.mxu1 %vm204_vm12, %v1014_v9 }
 0xc08   :  { %v1401_v24 = vpop.permute.xlu2 %1400 }
 0xc10   :  { %v1114_v26 = vpop.permute.xlu2 %1113 }
 0xc18   :  { %v1399_v33 = vpop.permute.xlu2 %1398 }
 0xc20   :  { %v1267_v44 = vpop.permute.xlu2 %1266 }
 0xc28   :  { %v1269_v45 = vpop.permute.xlu2 %1268 }
 0xc79   :  { %v1047_v5 = vpop.f32.mrf.mxu1 }
 0xc7a   :  { %v1048_v6 = vadd.f32 %v1047_v5, %v2325_v22 }
 0xc7c   :  { %v1053_v7 = vsel %vm236_vm13, %v1048_v6, -inf }
 0xc7d   :  { %1054 = vmax.xlane.f32.xlu1 %v1053_v7 }
 0xc81   :  { %v1050_v52 = vpop.f32.mrf.mxu1 }
 0xc82   :  { %v1051_v8 = vadd.f32 %v1050_v52, %v2329_v27 }
 0xc84   :  { %v1056_v10 = vsel %vm236_vm13, %v1051_v8, -inf }
 0xc85   :  { %1057 = vmax.xlane.f32.xlu1 %v1056_v10 }
 0xcf0   :  { %v1055_v11 = vpop.xlane.xlu1 %1054 }
 0xcf1   :  { %v1059_v12 = vsub.f32 %v1048_v6, %v1055_v11 }
 0xcf3   :  { %v1061_v48 = vmul.f32 1.442695, %v1059_v12 }
 0xcf5   :  { %2148 = vpow2.f32 %v1061_v48 }
 0xcf8   :  { %v1058_v13 = vpop.xlane.xlu1 %1057 }
 0xcf9   :  { %v1060_v14 = vsub.f32 %v1051_v8, %v1058_v13 }
 0xcfb   :  { %v2149_v15 = vpop.eup %2148  ;;  %v1063_v16 = vmul.f32 1.442695, %v1060_v14 }
 0xcfc   :  { %v1065_v19 = vsel %vm236_vm13, %v2149_v15, 0.0 }
 0xcfd   :  { %2150 = vpow2.f32 %v1063_v16  ;;  %1066 = vadd.xlane.f32.xlu1 %v1065_v19 }
 0xd03   :  { %v2151_v30 = vpop.eup %2150 }
 0xd04   :  { %v1068_v20 = vsel %vm236_vm13, %v2151_v30, 0.0 }
 0xd05   :  { %1069 = vadd.xlane.f32.xlu0 %v1068_v20 }
 0xd16   :  { %1117 = vrot.lane.b32.xlu1 %v1014_v9, %s2258_s5 }
 0xd19   :  { %1270 = vrot.lane.b32.xlu0 %v1011_v59, %s2259_s6 }
 0xd1e   :  { %1272 = vrot.lane.b32.xlu1 %v1014_v9, %s2259_s6 }
 0xd26   :  { %1394 = vrot.lane.b32.xlu1 %v1011_v59, %s2256_s29 }
 0xd2e   :  { %1396 = vrot.lane.b32.xlu1 %v1014_v9, %s2256_s29 }
 0xd70   :  { %v1067_v25 = vpop.xlane.xlu1 %1066 }
 0xd71   :  { %2152 = vrcp.f32 %v1067_v25 }
 0xd77   :  { %v2153_v28 = vpop.eup %2152 }
 0xd78   :  { %v1073_v29 = vmul.f32 %v2153_v28, %v2149_v15  ;;  %v1070_v32 = vpop.xlane.xlu0 %1069 }
 0xd79   :  { %2154 = vrcp.f32 %v1070_v32 }
 0xd7a   :  { %1980 = vmatmul.msk.f32.vlgmr.msra.gmra.mxu2 %vm236_vm13, %v1073_v29 }
 0xd7b   :  { %2000 = vmatpush.xpose.msk.msra.mxu2 %vm204_vm12, %v1401_v24 }
 0xd7f   :  { %v2155_v34 = vpop.eup %2154  ;;  %2001 = vmatpush.xpose.msk.msra.mxu2 %vm204_vm12, %v1399_v33 }
 0xd80   :  { %v1074_v35 = vmul.f32 %v2155_v34, %v2151_v30 }
 0xd82   :  { %1981 = vmatmul.msk.f32.gmra.mxu2 %vm236_vm13, %v1074_v35 }
 0xd88   :  { %v1118_v37 = vpop.permute.xlu1 %1117 }
 0xd89   :  { %1982 = vmatpush.xpose.msk.msra.mxu0 %vm204_vm12, %v1118_v37 }
 0xd8b   :  { %v1271_v41 = vpop.permute.xlu0 %1270 }
 0xd8d   :  { %1983 = vmatpush.xpose.msk.msra.mxu0 %vm204_vm12, %v1116_v21 }
 0xd90   :  { %1984 = vmatmul.msk.f32.vlgmr.msra.gmra.mxu0 %vm204_vm12, %v1112_v36  ;;  %v1273_v38 = vpop.permute.xlu1 %1272 }
 0xd91   :  { %1992 = vmatpush.xpose.msk.msrb.mxu0 %vm204_vm12, %v1273_v38 }
 0xd95   :  { %1993 = vmatpush.xpose.msk.msrb.mxu0 %vm204_vm12, %v1271_v41 }
 0xd98   :  { %1985 = vmatmul.msk.f32.gmra.mxu0 %vm204_vm12, %v1114_v26  ;;  %v1395_v49 = vpop.permute.xlu1 %1394 }
 0xda0   :  { %1994 = vmatmul.msk.f32.vlgmr.msrb.gmra.mxu0 %vm204_vm12, %v1267_v44  ;;  %v1397_v53 = vpop.permute.xlu1 %1396 }
 0xda8   :  { %1995 = vmatmul.msk.f32.gmra.mxu0 %vm204_vm12, %v1269_v45 }
 0xdfd   :  { %v1104_v46 = vpop.f32.mrf.mxu2 }
 0xdfe   :  { %1990 = vmatmul.msk.f32.vlgmr.msrb.gmra.mxu2 %vm204_vm12, %v1104_v46 }
 0xe05   :  { %v1107_v47 = vpop.f32.mrf.mxu2 }
 0xe06   :  { %1991 = vmatmul.msk.f32.gmra.mxu2 %vm204_vm12, %v1107_v47 }
 0xe0d   :  { %v1144_v50 = vpop.f32.mrf.mxu0 }
 0xe0e   :  { %v1145_v43 = vadd.f32 %v1144_v50, %v2325_v22  ;;  %2002 = vmatmul.msk.f32.vlgmr.msra.gmra.mxu2 %vm204_vm12, %v1395_v49 }
 0xe10   :  { %v1150_v51 = vsel %vm236_vm13, %v1145_v43, -inf }
 0xe11   :  { %1151 = vmax.xlane.f32.xlu1 %v1150_v51 }
 0xe15   :  { %v1147_v54 = vpop.f32.mrf.mxu0 }
 0xe16   :  { %v1148_v55 = vadd.f32 %v1147_v54, %v2329_v27  ;;  %2003 = vmatmul.msk.f32.gmra.mxu2 %vm204_vm12, %v1397_v53 }
 0xe18   :  { %v1153_v17 = vsel %vm236_vm13, %v1148_v55, -inf }
 0xe19   :  { %1154 = vmax.xlane.f32.xlu0 %v1153_v17 }
 0xe1d   :  { %v1299_v56 = vpop.f32.mrf.mxu0 }
 0xe1e   :  { %v1300_v58 = vadd.f32 %v1299_v56, %v2325_v22 }
 0xe20   :  { %v1305_v18 = vsel %vm236_vm13, %v1300_v58, -inf }
 0xe21   :  { %1306 = vmax.xlane.f32.xlu2 %v1305_v18 }
 0xe25   :  { %v1302_v4 = vpop.f32.mrf.mxu0 }
 0xe26   :  { %v1303_v60 = vadd.f32 %v1302_v4, %v2329_v27 }
 0xe28   :  { %v1308_v40 = vsel %vm236_vm13, %v1303_v60, -inf }
 0xe29   :  { %1309 = vmax.xlane.f32.xlu0 %v1308_v40 }
 0xe3d   :  { %2064 = vrot.lane.b32.xlu0 %v2467_v0, %s2260_s7 }
 0xe45   :  { %2074 = vrot.lane.b32.xlu0 %v2467_v0, %s2261_s8 }
 0xe81   :  { %v2521_v62 = vpop.f32.mrf.mxu2 }
 0xe84   :  { %v1152_v59 = vpop.xlane.xlu1 %1151 }
 0xe85   :  { %v1156_v9 = vsub.f32 %v1145_v43, %v1152_v59 }
 0xe87   :  { %v1158_v1 = vmul.f32 1.442695, %v1156_v9 }
 0xe89   :  { %v2523_v63 = vpop.f32.mrf.mxu2  ;;  %2156 = vpow2.f32 %v1158_v1 }
 0xe8c   :  { %v1155_v42 = vpop.xlane.xlu0 %1154 }
 0xe8d   :  { %v1157_v39 = vsub.f32 %v1148_v55, %v1155_v42 }
 0xe8f   :  { %v1160_v52 = vmul.f32 1.442695, %v1157_v39  ;;  %v2157_v10 = vpop.eup %2156  ;;  %v1362_v39 = vld [vmem:[#allocation2 + $0x188] sm:$0xff] }
 0xe90   :  { %v1162_v14 = vsel %vm236_vm13, %v2157_v10, 0.0 }
 0xe91   :  { %v1427_v2 = vpop.f32.mrf.mxu2  ;;  %2158 = vpow2.f32 %v1160_v52 }
 0xe92   :  { %v1428_v3 = vadd.f32 %v1427_v2, %v2325_v22 }
 0xe94   :  { %v1307_v5 = vpop.xlane.xlu2 %1306  ;;  %v1433_v6 = vsel %vm236_vm13, %v1428_v3, -inf }
 0xe95   :  { %v1311_v7 = vsub.f32 %v1300_v58, %v1307_v5  ;;  %1434 = vmax.xlane.f32.xlu1 %v1433_v6  ;;  %v1490_v5 = vld [vmem:[#allocation2 + $0x190] sm:$0xff] }
 0xe97   :  { %v1313_v8 = vmul.f32 1.442695, %v1311_v7  ;;  %v2159_v16 = vpop.eup %2158 }
 0xe98   :  { %v1165_v30 = vsel %vm236_vm13, %v2159_v16, 0.0 }
 0xe99   :  { %v1430_v11 = vpop.f32.mrf.mxu2  ;;  %2160 = vpow2.f32 %v1313_v8 }
 0xe9a   :  { %v1431_v12 = vadd.f32 %v1430_v11, %v2329_v27 }
 0xe9c   :  { %v1310_v48 = vpop.xlane.xlu0 %1309  ;;  %v1436_v13 = vsel %vm236_vm13, %v1431_v12, -inf }
 0xe9d   :  { %v1312_v22 = vsub.f32 %v1303_v60, %v1310_v48  ;;  %1437 = vmax.xlane.f32.xlu2 %v1436_v13  ;;  %1163 = vadd.xlane.f32.xlu1 %v1162_v14  ;;  %v1207_v60 = vld [vmem:[#allocation2 + $0x180] sm:$0xff] }
 0xe9e   :  { %1229 = vmatpush.msrb.mxu1 %v1207_v60 }
 0xe9f   :  { %v1315_v15 = vmul.f32 1.442695, %v1312_v22  ;;  %v2161_v19 = vpop.eup %2160  ;;  %v2089_v22 = vld [vmem:[#allocation2 + $0x198] ss:$0 sm:$0xff] }
 0xea0   :  { %v1317_v20 = vsel %vm236_vm13, %v2161_v19, 0.0  ;;  %1384 = vmatpush.msra.mxu1 %v1362_v39 }
 0xea1   :  { %2162 = vpow2.f32 %v1315_v15 }
 0xea5   :  { %1166 = vadd.xlane.f32.xlu2 %v1165_v30  ;;  %1318 = vadd.xlane.f32.xlu1 %v1317_v20 }
 0xea7   :  { %v2163_v27 = vpop.eup %2162 }
 0xea8   :  { %v1320_v21 = vsel %vm236_vm13, %v2163_v27, 0.0 }
 0xead   :  { %1321 = vadd.xlane.f32.xlu2 %v1320_v21 }
 0xeaf   :  { %v2065_v23 = vpop.permute.xlu0 %2064 }
 0xeb0   :  { %v2066_v36 = vunpack.i.l.bf16 %v2065_v23  ;;  %v2067_v24 = vunpack.i.h.bf16 %v2065_v23 }
 0xeb2   :  { %1198 = vmatpush.msrb.mxu3 %v2066_v36 }
 0xeb4   :  { %1199 = vmatpush.msrb.mxu3 %v2067_v24 }
 0xeb7   :  { %v2075_v25 = vpop.permute.xlu0 %2074 }
 0xeb8   :  { %v2076_v26 = vunpack.i.l.bf16 %v2075_v25  ;;  %v2077_v28 = vunpack.i.h.bf16 %v2075_v25 }
 0xeba   :  { %1481 = vmatpush.msra.mxu0 %v2076_v26 }
 0xebc   :  { %1482 = vmatpush.msra.mxu0 %v2077_v28 }
 0xebe   :  { %2069 = vrot.lane.b32.xlu1 %v2467_v0, %s2262_s9 }
 0xf08   :  { %v1435_v29 = vpop.xlane.xlu1 %1434 }
 0xf09   :  { %v1439_v32 = vsub.f32 %v1428_v3, %v1435_v29 }
 0xf0b   :  { %v1441_v33 = vmul.f32 1.442695, %v1439_v32 }
 0xf0d   :  { %2164 = vpow2.f32 %v1441_v33 }
 0xf10   :  { %v1438_v34 = vpop.xlane.xlu2 %1437  ;;  %v1164_v35 = vpop.xlane.xlu1 %1163 }
 0xf11   :  { %v1440_v37 = vsub.f32 %v1431_v12, %v1438_v34  ;;  %2166 = vrcp.f32 %v1164_v35 }
 0xf13   :  { %v2165_v38 = vpop.eup %2164  ;;  %v1443_v41 = vmul.f32 1.442695, %v1440_v37 }
 0xf14   :  { %v1445_v44 = vsel %vm236_vm13, %v2165_v38, 0.0 }
 0xf15   :  { %2168 = vpow2.f32 %v1443_v41  ;;  %1446 = vadd.xlane.f32.xlu2 %v1445_v44  ;;  %v1582_v41 = vld [vmem:[#allocation2 + $0x1c0] sm:$0xff]  ;;  %v1581_v44 = vld [vmem:[#allocation2 + $0x1b8] sm:$0xff] }
 0xf17   :  { %v2167_v45 = vpop.eup %2166 }
 0xf18   :  { %v1170_v46 = vmul.f32 %v2167_v45, %v2157_v10  ;;  %v1167_v47 = vpop.xlane.xlu2 %1166  ;;  %v1319_v51 = vpop.xlane.xlu1 %1318  ;;  %v1580_v45 = vld [vmem:[#allocation2 + $0x1b0] sm:$0xff] }
 0xf19   :  { %2170 = vrcp.f32 %v1167_v47 }
 0xf1a   :  { %1986 = vmatmul.msk.f32.vlgmr.msrb.gmra.mxu3 %vm236_vm13, %v1170_v46  ;;  %2172 = vrcp.f32 %v1319_v51 }
 0xf1b   :  { %v2169_v0 = vpop.eup %2168 }
 0xf1c   :  { %v1448_v49 = vsel %vm236_vm13, %v2169_v0, 0.0 }
 0xf1d   :  { %1449 = vadd.xlane.f32.xlu2 %v1448_v49 }
 0xf1f   :  { %v2171_v50 = vpop.eup %2170 }
 0xf20   :  { %v1171_v43 = vmul.f32 %v2171_v50, %v2159_v16  ;;  %v1322_v53 = vpop.xlane.xlu2 %1321  ;;  %v2173_v55 = vpop.eup %2172 }
 0xf21   :  { %2174 = vrcp.f32 %v1322_v53  ;;  %v1325_v58 = vmul.f32 %v2173_v55, %v2161_v19 }
 0xf22   :  { %1987 = vmatmul.msk.f32.gmra.mxu3 %vm236_vm13, %v1171_v43 }
 0xf27   :  { %v2175_v18 = vpop.eup %2174 }
 0xf28   :  { %v1326_v4 = vmul.f32 %v2175_v18, %v2163_v27 }
 0xf30   :  { %v2070_v54 = vpop.permute.xlu1 %2069 }
 0xf31   :  { %v2071_v17 = vunpack.i.l.bf16 %v2070_v54  ;;  %v2072_v56 = vunpack.i.h.bf16 %v2070_v54 }
 0xf33   :  { %1353 = vmatpush.msra.mxu3 %v2071_v17 }
 0xf35   :  { %1354 = vmatpush.msra.mxu3 %v2072_v56 }
 0xf36   :  { %1996 = vmatmul.msk.f32.vlgmr.msra.gmra.mxu3 %vm236_vm13, %v1325_v58 }
 0xf37   :  { %1512 = vmatpush.msrb.mxu3 %v1490_v5 }
 0xf3e   :  { %1997 = vmatmul.msk.f32.gmra.mxu3 %vm236_vm13, %v1326_v4  ;;  %v2090_v4 = vld [vmem:[#allocation2 + $0x1a0] ss:$0 sm:$0xff] }
 0xf88   :  { %v1447_v40 = vpop.xlane.xlu2 %1446 }
 0xf89   :  { %2176 = vrcp.f32 %v1447_v40 }
 0xf8f   :  { %v2177_v59 = vpop.eup %2176 }
 0xf90   :  { %v1453_v9 = vmul.f32 %v2177_v59, %v2165_v38  ;;  %v1450_v1 = vpop.xlane.xlu2 %1449 }
 0xf91   :  { %2178 = vrcp.f32 %v1450_v1 }
 0xf92   :  { %2004 = vmatmul.msk.f32.vlgmr.msra.gmra.mxu0 %vm236_vm13, %v1453_v9  ;;  %v2091_v9 = vld [vmem:[#allocation2 + $0x1a8] ss:$0 sm:$0xff] }
 0xf97   :  { %v2179_v42 = vpop.eup %2178 }
 0xf98   :  { %v1454_v2 = vmul.f32 %v2179_v42, %v2169_v0 }
 0xf9a   :  { %2005 = vmatmul.msk.f32.gmra.mxu0 %vm236_vm13, %v1454_v2 }
 0xf9d   :  { %v1201_v3 = vpop.f32.mrf.mxu3 }
 0xf9e   :  { %1988 = vmatmul.msk.f32.vlgmr.msrb.gmra.mxu1 %vm204_vm12, %v1201_v3 }
 0xfa5   :  { %v1204_v6 = vpop.f32.mrf.mxu3 }
 0xfa6   :  { %1989 = vmatmul.msk.f32.gmra.mxu1 %vm204_vm12, %v1204_v6 }
 0xfb9   :  { %v1356_v7 = vpop.f32.mrf.mxu3 }
 0xfba   :  { %1998 = vmatmul.msk.f32.vlgmr.msra.gmra.mxu1 %vm204_vm12, %v1356_v7 }
 0xfc1   :  { %v1359_v52 = vpop.f32.mrf.mxu3 }
 0xfc2   :  { %1999 = vmatmul.msk.f32.gmra.mxu1 %vm204_vm12, %v1359_v52 }
0x100f   :  { %v1484_v8 = vpop.f32.mrf.mxu0 }
0x1010   :  { %2006 = vmatmul.msk.f32.vlgmr.msrb.gmra.mxu3 %vm204_vm12, %v1484_v8  ;;  %v2092_v8 = vld [vmem:[#allocation2 + $0x1d0] ss:$0 sm:$0xff] }
0x1017   :  { %v1487_v10 = vpop.f32.mrf.mxu0 }
0x1018   :  { %2007 = vmatmul.msk.f32.gmra.mxu3 %vm204_vm12, %v1487_v10 }
0x101b   :  { %v1231_v11 = vpop.f32.mrf.mxu1 }
0x101c   :  { %v1261_v13 = vadd.f32 %v2521_v62, %v1231_v11 }
0x1023   :  { %v1234_v12 = vpop.f32.mrf.mxu1 }
0x1024   :  { %v1264_v20 = vadd.f32 %v2523_v63, %v1234_v12 }
0x1037   :  { %v1386_v48 = vpop.f32.mrf.mxu1 }
0x1038   :  { %v1392_v14 = vadd.f32 %v1386_v48, %v1261_v13 }
0x103f   :  { %v1389_v30 = vpop.f32.mrf.mxu1 }
0x1040   :  { %v1393_v21 = vadd.f32 %v1389_v30, %v1264_v20  ;;  %v1709_v30 = vld [vmem:[#allocation2 + $0x208] sm:$0xff] }
0x1093   :  { %v1514_v15 = vpop.f32.mrf.mxu3 }
0x1094   :  { %v1520_v16 = vadd.f32 %v1514_v15, %v1392_v14 }
0x1096   :  { %v1524_v19 = vadd.f32 %v2089_v22, %v1520_v16 }
0x1098   :  { %v1526_v27 = vadd.f32 %v1524_v19, %v2457_v57 }
0x109a   :  { %v1530_v23 = vsel %vm95_vm4, %v1526_v27, 0.0 }
0x109b   :  { %1531 = vadd.xlane.f32.xlu0 %v1530_v23  ;;  %v1517_v36 = vpop.f32.mrf.mxu3  ;;  %v1708_v23 = vld [vmem:[#allocation2 + $0x200] sm:$0xff] }
0x109c   :  { %v1521_v24 = vadd.f32 %v1517_v36, %v1393_v21 }
0x109e   :  { %v1525_v25 = vadd.f32 %v2089_v22, %v1521_v24  ;;  %v1710_v22 = vld [vmem:[#allocation2 + $0x210] sm:$0xff] }
0x109f   :  { %1727 = vmatpush.msrb.mxu2 %v1710_v22 }
0x10a0   :  { %v1527_v26 = vadd.f32 %v1525_v25, %v2461_v61  ;;  %v1583_v61 = vld [vmem:[#allocation2 + $0x1c8] sm:$0xff] }
0x10a1   :  { %1604 = vmatpush.msrb.mxu1 %v1583_v61  ;;  %1728 = vmatpush.msrb.mxu2 %v1709_v30 }
0x10a2   :  { %v1533_v62 = vsel %vm95_vm4, %v1527_v26, 0.0 }
0x10a3   :  { %1534 = vadd.xlane.f32.xlu2 %v1533_v62  ;;  %1605 = vmatpush.msrb.mxu1 %v1582_v41  ;;  %v1704_v41 = vld [vmem:[#allocation2 + $0x1e0] sm:$0xff] }
0x10a4   :  { %1729 = vmatpush.msrb.mxu2 %v1708_v23 }
0x10a5   :  { %1606 = vmatpush.msrb.mxu1 %v1581_v44 }
0x10a7   :  { %1607 = vmatpush.msrb.mxu1 %v1580_v45 }
0x110e   :  { %v1532_v28 = vpop.xlane.xlu0 %1531 }
0x110f   :  { %v1536_v29 = vmul.f32 %v1532_v28, %v2300_v31 }
0x1111   :  { %v1538_v32 = vsub.f32 %v1526_v27, %v1536_v29 }
0x1113   :  { %v1540_v33 = vmul.f32 %v1538_v32, %v1538_v32 }
0x1115   :  { %v1542_v63 = vsel %vm95_vm4, %v1540_v33, 0.0 }
0x1116   :  { %1543 = vadd.xlane.f32.xlu1 %v1542_v63  ;;  %v1535_v57 = vpop.xlane.xlu2 %1534 }
0x1117   :  { %v1537_v34 = vmul.f32 %v1535_v57, %v2300_v31 }
0x1119   :  { %v1539_v35 = vsub.f32 %v1527_v26, %v1537_v34  ;;  %v1707_v26 = vld [vmem:[#allocation2 + $0x1f8] sm:$0xff]  ;;  %v1705_v34 = vld [vmem:[#allocation2 + $0x1e8] sm:$0xff] }
0x111a   :  { %1730 = vmatpush.msrb.mxu2 %v1707_v26 }
0x111b   :  { %v1541_v37 = vmul.f32 %v1539_v35, %v1539_v35 }
0x111d   :  { %v1545_v38 = vsel %vm95_vm4, %v1541_v37, 0.0 }
0x111e   :  { %1546 = vadd.xlane.f32.xlu2 %v1545_v38 }
0x1189   :  { %v1544_v46 = vpop.xlane.xlu1 %1543 }
0x118a   :  { %v1548_v47 = vmul.f32 %v1544_v46, %v2300_v31 }
0x118c   :  { %v1550_v0 = vadd.f32 1e-12, %v1548_v47  ;;  %v1703_v47 = vld [vmem:[#allocation2 + $0x1d8] sm:$0xff] }
0x118e   :  { %2180 = vrsqrt.f32 %v1550_v0  ;;  %vm1558_vm7 = vweird.f32 %v1550_v0 }
0x1191   :  { %v1547_v49 = vpop.xlane.xlu2 %1546 }
0x1192   :  { %v1549_v50 = vmul.f32 %v1547_v49, %v2300_v31 }
0x1194   :  { %v2181_v43 = vpop.eup %2180  ;;  %v1551_v51 = vadd.f32 1e-12, %v1549_v50 }
0x1195   :  { %v1553_v53 = vmul.f32 %v2181_v43, %v1550_v0  ;;  %vm1559_vm12 = vweird.f32 %v2181_v43 }
0x1196   :  { %2182 = vrsqrt.f32 %v1551_v51  ;;  %vm1560_vm8 = vmor %vm1558_vm7, %vm1559_vm12  ;;  %vm1568_vm10 = vweird.f32 %v1551_v51 }
0x1197   :  { %v1554_v54 = vmul.f32 %v2181_v43, %v1553_v53 }
0x1199   :  { %v1555_v55 = vmul.f32 0.5, %v1554_v54 }
0x119b   :  { %v1556_v17 = vsub.f32 1.5, %v1555_v55 }
0x119c   :  { %v2183_v56 = vpop.eup %2182 }
0x119d   :  { %v1557_v58 = vmul.f32 %v2181_v43, %v1556_v17  ;;  %v1563_v18 = vmul.f32 %v2183_v56, %v1551_v51  ;;  %vm1569_vm9 = vweird.f32 %v2183_v56 }
0x119e   :  { %vm1570_vm14 = vmor %vm1568_vm10, %vm1569_vm9 }
0x119f   :  { %v1561_v60 = vsel %vm1560_vm8, %v2181_v43, %v1557_v58  ;;  %v1564_v40 = vmul.f32 %v2183_v56, %v1563_v18 }
0x11a0   :  { %v1572_v59 = vmul.f32 %v1561_v60, %v1538_v32  ;;  %v1706_v32 = vld [vmem:[#allocation2 + $0x1f0] sm:$0xff] }
0x11a1   :  { %v1565_v1 = vmul.f32 0.5, %v1564_v40  ;;  %1731 = vmatpush.msrb.mxu2 %v1706_v32 }
0x11a2   :  { %v1575_v42 = vmul.f32 %v2090_v4, %v1572_v59 }
0x11a3   :  { %v1566_v2 = vsub.f32 1.5, %v1565_v1  ;;  %1732 = vmatpush.msrb.mxu2 %v1705_v34 }
0x11a4   :  { %v2561_v39 = vadd.f32 %v2091_v9, %v1575_v42 }
0x11a5   :  { %v1567_v3 = vmul.f32 %v2183_v56, %v1566_v2  ;;  %1733 = vmatpush.msrb.mxu2 %v1704_v41 }
0x11a6   :  { %2008 = vmatmul.msk.f32.vlgmr.msrb.gmra.mxu1 %vm95_vm4, %v2561_v39 }
0x11a7   :  { %v1571_v5 = vsel %vm1570_vm14, %v2183_v56, %v1567_v3  ;;  %1734 = vmatpush.msrb.mxu2 %v1703_v47 }
0x11a8   :  { %v1573_v6 = vmul.f32 %v1571_v5, %v1539_v35 }
0x11aa   :  { %v1576_v7 = vmul.f32 %v2090_v4, %v1573_v6 }
0x11ac   :  { %v2565_v52 = vadd.f32 %v2091_v9, %v1576_v7 }
0x11ae   :  { %2009 = vmatmul.msk.f32.gmra.mxu1 %vm95_vm4, %v2565_v52 }
0x1223   :  { %v1609_v10 = vpop.f32.mrf.mxu1 }
0x1224   :  { %v2569_v11 = vadd.f32 %v2092_v8, %v1609_v10 }
0x1226   :  { %v2572_v12 = vmul.f32 0.70710677, %v2569_v11 }
0x1228   :  { %v1619_v48 = vmul.f32 %v2572_v12, %v2572_v12 }
0x122a   :  { %v1620_v13 = vmin.f32 %v1619_v48, 16.0 }
0x122b   :  { %v1612_v14 = vpop.f32.mrf.mxu1 }
0x122c   :  { %v1621_v15 = vmul.f32 2.1237322e-06, %v1620_v13  ;;  %v1632_v16 = vmul.f32 3.8918573e-05, %v1620_v13  ;;  %v2576_v19 = vadd.f32 %v2092_v8, %v1612_v14 }
0x122e   :  { %v1622_v20 = vadd.f32 0.00028619796, %v1621_v15  ;;  %v1633_v27 = vadd.f32 0.001143296, %v1632_v16  ;;  %v2579_v21 = vmul.f32 0.70710677, %v2576_v19 }
0x1230   :  { %v1623_v36 = vmul.f32 %v1622_v20, %v1620_v13  ;;  %v1634_v24 = vmul.f32 %v1633_v27, %v1620_v13  ;;  %v1659_v25 = vmul.f32 %v2579_v21, %v2579_v21 }
0x1232   :  { %v1635_v62 = vadd.f32 0.014752088, %v1634_v24  ;;  %v1624_v28 = vadd.f32 0.0036580483, %v1623_v36  ;;  %v1660_v29 = vmin.f32 %v1659_v25, 16.0 }
0x1234   :  { %v1636_v33 = vmul.f32 %v1635_v62, %v1620_v13  ;;  %v1661_v63 = vmul.f32 2.1237322e-06, %v1660_v29  ;;  %v1672_v57 = vmul.f32 3.8918573e-05, %v1660_v29  ;;  %v1625_v37 = vmul.f32 %v1624_v28, %v1620_v13 }
0x1235   :  { %v1615_v28 = vmul.f32 0.5, %v2569_v11 }
0x1236   :  { %v1637_v35 = vadd.f32 0.112945676, %v1636_v33  ;;  %v1662_v38 = vadd.f32 0.00028619796, %v1661_v63  ;;  %v1673_v61 = vadd.f32 0.001143296, %v1672_v57 }
0x1237   :  { %v1626_v49 = vadd.f32 0.05243302, %v1625_v37 }
0x1238   :  { %v1638_v44 = vmul.f32 %v1637_v35, %v1620_v13  ;;  %v1663_v45 = vmul.f32 %v1662_v38, %v1660_v29  ;;  %v1674_v46 = vmul.f32 %v1673_v61, %v1660_v29  ;;  %v1616_v38 = vmul.f32 0.5, %v2576_v19 }
0x1239   :  { %v1627_v55 = vmul.f32 %v1626_v49, %v1620_v13 }
0x123a   :  { %v1639_v0 = vadd.f32 0.4994258, %v1638_v44  ;;  %v1675_v50 = vadd.f32 0.014752088, %v1674_v46  ;;  %v1664_v51 = vadd.f32 0.0036580483, %v1663_v45 }
0x123b   :  { %v1628_v18 = vadd.f32 0.18741608, %v1627_v55  ;;  %v2093_v44 = vld [vmem:[#allocation2 + $0x218] ss:$0 sm:$0xff] }
0x123c   :  { %v1640_v43 = vmul.f32 %v1639_v0, %v1620_v13  ;;  %v1676_v53 = vmul.f32 %v1675_v50, %v1660_v29  ;;  %v1665_v56 = vmul.f32 %v1664_v51, %v1660_v29 }
0x123d   :  { %v1629_v9 = vmul.f32 %v1628_v18, %v1620_v13 }
0x123e   :  { %v1641_v54 = vadd.f32 1.0, %v1640_v43  ;;  %v1677_v17 = vadd.f32 0.112945676, %v1676_v53  ;;  %v1666_v60 = vadd.f32 0.05243302, %v1665_v56 }
0x123f   :  { %v1630_v6 = vadd.f32 1.1283791, %v1629_v9  ;;  %v1821_v9 = vld [vmem:[#allocation2 + $0x238] sm:$0xff] }
0x1240   :  { %2184 = vrcp.f32 %v1641_v54  ;;  %v1678_v58 = vmul.f32 %v1677_v17, %v1660_v29  ;;  %v1667_v2 = vmul.f32 %v1666_v60, %v1660_v29  ;;  %v1653_v5 = vand.u32 2147483648, %v1641_v54  ;;  %v1823_v60 = vld [vmem:[#allocation2 + $0x248] sm:$0xff] }
0x1241   :  { %v1651_v8 = vand.u32 2147483647, %v1641_v54  ;;  %vm1647_vm0 = vweird.f32 %v1641_v54  ;;  %v1631_v15 = vmul.f32 %v1630_v6, %v2572_v12  ;;  %1841 = vmatpush.msra.mxu3 %v1823_v60 }
0x1242   :  { %v1679_v4 = vadd.f32 0.4994258, %v1678_v58  ;;  %v1668_v10 = vadd.f32 0.18741608, %v1667_v2  ;;  %v1654_v14 = vor.u32 1.1754944e-38, %v1653_v5 }
0x1243   :  { %vm1652_vm2 = vcmp.eq.f32.partialorder %v1651_v8, 8.507059e+37 }
0x1244   :  { %v1680_v40 = vmul.f32 %v1679_v4, %v1660_v29  ;;  %v1669_v30 = vmul.f32 %v1668_v10, %v1660_v29 }
0x1246   :  { %v2185_v59 = vpop.eup %2184  ;;  %v1681_v42 = vadd.f32 1.0, %v1680_v40  ;;  %v1670_v25 = vadd.f32 1.1283791, %v1669_v30  ;;  %v1822_v40 = vld [vmem:[#allocation2 + $0x240] sm:$0xff] }
0x1247   :  { %v1643_v1 = vmul.f32 %v2185_v59, %v1641_v54  ;;  %vm1648_vm15 = vweird.f32 %v2185_v59  ;;  %1842 = vmatpush.msra.mxu3 %v1822_v40 }
0x1248   :  { %2186 = vrcp.f32 %v1681_v42  ;;  %vm1649_vm1 = vmor %vm1647_vm0, %vm1648_vm15  ;;  %v1693_v24 = vand.u32 2147483648, %v1681_v42  ;;  %v1691_v62 = vand.u32 2147483647, %v1681_v42  ;;  %vm1687_vm5 = vweird.f32 %v1681_v42 }
0x1249   :  { %v1644_v3 = vsub.f32 1.0, %v1643_v1  ;;  %v1671_v57 = vmul.f32 %v1670_v25, %v2579_v21  ;;  %1843 = vmatpush.msra.mxu3 %v1821_v9  ;;  %vm1860_vm15 = vcmask 1042432   ;;  %vm1856_vm0 = vcmask 23552  }
0x124a   :  { %v1694_v12 = vor.u32 1.1754944e-38, %v1693_v24  ;;  %vm1692_vm12 = vcmp.eq.f32.partialorder %v1691_v62, 8.507059e+37 }
0x124b   :  { %v1645_v7 = vmul.f32 %v2185_v59, %v1644_v3 }
0x124d   :  { %v1646_v48 = vadd.f32 %v2185_v59, %v1645_v7 }
0x124e   :  { %v2187_v22 = vpop.eup %2186 }
0x124f   :  { %v1650_v16 = vsel %vm1649_vm1, %v2185_v59, %v1646_v48  ;;  %v1683_v20 = vmul.f32 %v2187_v22, %v1681_v42  ;;  %vm1688_vm3 = vweird.f32 %v2187_v22  ;;  %v1820_v42 = vld [vmem:[#allocation2 + $0x230] sm:$0xff] }
0x1250   :  { %v1655_v13 = vsel %vm1652_vm2, %v1654_v14, %v1650_v16  ;;  %vm1689_vm6 = vmor %vm1687_vm5, %vm1688_vm3  ;;  %1844 = vmatpush.msra.mxu3 %v1820_v42 }
0x1251   :  { %v1656_v27 = vmul.f32 %v1655_v13, %v1631_v15  ;;  %v1684_v23 = vsub.f32 1.0, %v1683_v20  ;;  %v2095_v13 = vld [vmem:[#allocation2 + $0x228] ss:$0 sm:$0xff] }
0x1253   :  { %v2010_v36 = vclamps-f32 %v1656_v27, 1.0  ;;  %v1685_v26 = vmul.f32 %v2187_v22, %v1684_v23 }
0x1255   :  { %v1699_v32 = vadd.f32 1.0, %v2010_v36  ;;  %v1686_v33 = vadd.f32 %v2187_v22, %v1685_v26 }
0x1257   :  { %v1701_v63 = vmul.f32 %v1699_v32, %v1615_v28  ;;  %v1690_v29 = vsel %vm1689_vm6, %v2187_v22, %v1686_v33  ;;  %v2094_v22 = vld [vmem:[#allocation2 + $0x220] ss:$0 sm:$0xff]  ;;  %v1796_v28 = vld [vmem:[#allocation2 + $0x68] sm:$0x3]  ;;  %v1853_v32 = vld [vmem:[#allocation2 + $0x270] sm:$0xff] }
0x1258   :  { %v1695_v34 = vsel %vm1692_vm12, %v1694_v12, %v1690_v29  ;;  %v1852_v33 = vld [vmem:[#allocation2 + $0x268] sm:$0xff]  ;;  %1899 = vmatpush.msra.mxu1 %v1853_v32  ;;  %v1855_v12 = vld [vmem:[#allocation2 + $0x278] sm:$0x7] }
0x1259   :  { %2012 = vmatmul.msk.f32.vlgmr.msrb.gmra.mxu2 %vm897_vm11, %v1701_v63  ;;  %v1696_v35 = vmul.f32 %v1695_v34, %v1671_v57  ;;  %v1851_v57 = vld [vmem:[#allocation2 + $0x260] sm:$0xff]  ;;  %v1850_v29 = vld [vmem:[#allocation2 + $0x258] sm:$0xff] }
0x125a   :  { %1900 = vmatpush.msra.mxu1 %v1852_v33  ;;  %v1854_v34 = vld [vmem:[%s2610_s2] sm:$0x3] }
0x125b   :  { %v2011_v37 = vclamps-f32 %v1696_v35, 1.0  ;;  %v2096_v35 = vld [vmem:[#allocation2 + $0x250] ss:$0 sm:$0xff] }
0x125c   :  { %1901 = vmatpush.msra.mxu1 %v1851_v57 }
0x125d   :  { %v1700_v61 = vadd.f32 1.0, %v2011_v37 }
0x125e   :  { %1902 = vmatpush.msra.mxu1 %v1850_v29 }
0x125f   :  { %v1702_v41 = vmul.f32 %v1700_v61, %v1616_v38 }
0x1261   :  { %2013 = vmatmul.msk.f32.gmra.mxu2 %vm897_vm11, %v1702_v41 }
0x12dc   :  { %v1736_v11 = vpop.f32.mrf.mxu2 }
0x12dd   :  { %v1737_v21 = vadd.f32 %v2093_v44, %v1736_v11  ;;  %v2097_v11 = vld [vmem:[#allocation2 + $0x280] ss:$0 sm:$0xff] }
0x12df   :  { %v1742_v49 = vadd.f32 %v1737_v21, %v2561_v39 }
0x12e1   :  { %v1746_v50 = vsel %vm95_vm4, %v1742_v49, 0.0 }
0x12e4   :  { %v1739_v45 = vpop.f32.mrf.mxu2 }
0x12e5   :  { %v1740_v46 = vadd.f32 %v2093_v44, %v1739_v45 }
0x12e7   :  { %v1743_v47 = vadd.f32 %v1740_v46, %v2565_v52 }
0x12e9   :  { %v1749_v0 = vsel %vm95_vm4, %v1743_v47, 0.0 }
0x12ea   :  { %1750 = vadd.xlane.f32.xlu2 %v1749_v0 }
0x12f2   :  { %1747 = vadd.xlane.f32.xlu2 %v1746_v50 }
0x135d   :  { %v1751_v19 = vpop.xlane.xlu2 %1750 }
0x135e   :  { %v1753_v43 = vmul.f32 %v1751_v19, %v2300_v31 }
0x1360   :  { %v1755_v51 = vsub.f32 %v1743_v47, %v1753_v43 }
0x1362   :  { %v1757_v53 = vmul.f32 %v1755_v51, %v1755_v51 }
0x1364   :  { %v1761_v54 = vsel %vm95_vm4, %v1757_v53, 0.0 }
0x1365   :  { %1762 = vadd.xlane.f32.xlu2 %v1761_v54  ;;  %v1748_v55 = vpop.xlane.xlu2 %1747 }
0x1366   :  { %v1752_v52 = vmul.f32 %v1748_v55, %v2300_v31 }
0x1368   :  { %v1754_v17 = vsub.f32 %v1742_v49, %v1752_v52 }
0x136a   :  { %v1756_v56 = vmul.f32 %v1754_v17, %v1754_v17 }
0x136c   :  { %v1758_v58 = vsel %vm95_vm4, %v1756_v56, 0.0 }
0x136d   :  { %1759 = vadd.xlane.f32.xlu0 %v1758_v58 }
0x13d8   :  { %v1763_v39 = vpop.xlane.xlu2 %1762 }
0x13d9   :  { %v1765_v18 = vmul.f32 %v1763_v39, %v2300_v31 }
0x13db   :  { %v1767_v4 = vadd.f32 1e-12, %v1765_v18 }
0x13dd   :  { %2188 = vrsqrt.f32 %v1767_v4  ;;  %vm1784_vm7 = vweird.f32 %v1767_v4 }
0x13e0   :  { %v1760_v59 = vpop.xlane.xlu0 %1759 }
0x13e1   :  { %v1764_v1 = vmul.f32 %v1760_v59, %v2300_v31 }
0x13e3   :  { %v2189_v2 = vpop.eup %2188  ;;  %v1766_v3 = vadd.f32 1e-12, %v1764_v1 }
0x13e4   :  { %v1779_v5 = vmul.f32 %v2189_v2, %v1767_v4  ;;  %vm1785_vm11 = vweird.f32 %v2189_v2 }
0x13e5   :  { %2190 = vrsqrt.f32 %v1766_v3  ;;  %vm1786_vm8 = vmor %vm1784_vm7, %vm1785_vm11  ;;  %vm1774_vm10 = vweird.f32 %v1766_v3 }
0x13e6   :  { %v1780_v6 = vmul.f32 %v2189_v2, %v1779_v5 }
0x13e8   :  { %v1781_v7 = vmul.f32 0.5, %v1780_v6 }
0x13ea   :  { %v1782_v8 = vsub.f32 1.5, %v1781_v7 }
0x13eb   :  { %v2191_v10 = vpop.eup %2190 }
0x13ec   :  { %v1783_v48 = vmul.f32 %v2189_v2, %v1782_v8  ;;  %v1769_v14 = vmul.f32 %v2191_v10, %v1766_v3  ;;  %vm1775_vm9 = vweird.f32 %v2191_v10 }
0x13ed   :  { %vm1776_vm14 = vmor %vm1774_vm10, %vm1775_vm9 }
0x13ee   :  { %v1787_v15 = vsel %vm1786_vm8, %v2189_v2, %v1783_v48  ;;  %v1770_v31 = vmul.f32 %v2191_v10, %v1769_v14 }
0x13ef   :  { %v1789_v16 = vmul.f32 %v1787_v15, %v1755_v51 }
0x13f0   :  { %v1771_v30 = vmul.f32 0.5, %v1770_v31 }
0x13f1   :  { %v1792_v20 = vmul.f32 %v2094_v22, %v1789_v16 }
0x13f2   :  { %v1772_v27 = vsub.f32 1.5, %v1771_v30 }
0x13f3   :  { %v1795_v23 = vadd.f32 %v2095_v13, %v1792_v20 }
0x13f4   :  { %v1773_v36 = vmul.f32 %v2191_v10, %v1772_v27 }
0x13f5   :  { %1814 = vmatpush.msrb.mxu0 %v1795_v23 }
0x13f6   :  { %v1777_v24 = vsel %vm1776_vm14, %v2191_v10, %v1773_v36 }
0x13f7   :  { %v1788_v25 = vmul.f32 %v1777_v24, %v1754_v17 }
0x13f9   :  { %v1791_v26 = vmul.f32 %v2094_v22, %v1788_v25 }
0x13fb   :  { %v1794_v62 = vadd.f32 %v2095_v13, %v1791_v26 }
0x13fd   :  { %1815 = vmatpush.msrb.mxu0 %v1794_v62 }
0x13fe   :  { %2014 = vmatmul.msk.f32.vlgmr.msrb.gmra.mxu0 %vm236_vm13, %v1796_v28  ;;  %vm1910_vm13 = vcmask 50176  }
0x13ff   :  { %2016 = vmatpush.msk.msra.mxu0 %vm1860_vm15, %v1855_v12 }
0x1406   :  { %2017 = vmatmul.msk.f32.vlgmr.msra.gmra.mxu0 %vm1856_vm0, %v1854_v34 }
0x147b   :  { %v1817_v63 = vpop.f32.mrf.mxu0 }
0x147c   :  { %2015 = vmatmul.msk.f32.vlgmr.msra.gmra.mxu3 %vm95_vm4, %v1817_v63 }
0x1483   :  { %v1881_v41 = vpop.f32.mrf.mxu0 }
0x14ff   :  { %v1846_v37 = vpop.f32.mrf.mxu3 }
0x1500   :  { %v1847_v38 = vadd.f32 %v2096_v35, %v1846_v37 }
0x1502   :  { %2192 = vtanh.f32 %v1847_v38 }
0x1508   :  { %v2193_v61 = vpop.eup %2192 }
0x1509   :  { %2018 = vmatmul.msk.f32.vlgmr.msra.gmra.mxu1 %vm95_vm4, %v2193_v61 }
0x1586   :  { %v1904_v44 = vpop.f32.mrf.mxu1 }
0x1587   :  { %v1905_v45 = vadd.f32 %v1904_v44, %v1881_v41 }
0x1589   :  { %v1909_v46 = vadd.f32 %v2097_v11, %v1905_v45 }
0x158b   :  { %1911 = vst.msk [vmem:[#allocation5] sm:$0x3] %vm1910_vm13, %v1909_v46 }
0x158c   :  { %1922 = dma.vmem_to_hbm [thread:$0]  %s1918_s13, 32, %s1920_s16, [#allocation4]  }
0x158d   :  { %2244 = dma.done.wait [#allocation4], 32  }
0x158e   :  { %2245 = vsyncadd [#allocation4], 4294967264 }
0x158f   :  { %1927 = vsyncpa [#allocation3], 1 }
0x1590   :  { %1928 = vsyncpa [#allocation4], 1 }

</bundles_post_ra>
